<compile_context>
chip_gen: v6e
topology: v6e:2x2x1
jax: 0.10.0
libtpu: 0.0.40
codegen_flags: <defaults>
</compile_context>

<pallas_src>
import jax
import jax.numpy as jnp
import numpy as np
from jax import lax
from jax.experimental import pallas as pl
from jax.experimental.pallas import tpu as pltpu

# ------------------------------------------------------------------ config --
DIM = 32          # "dim" in the module (default 768), kept small for the test
N_WORDS = 8       # protein sequence length
N_ATOMS = 10      # number of ligand atoms (single graph -> global_mean_pool)
VOCAB = 20        # n_word
WINDOW = 2        # conv kernel size = 2*WINDOW+1 (module default window=11)
LAYER_CNN = 3
LAYER_OUT = 3
BATCH = 4         # number of (compound, protein) pairs per call

K = 2 * WINDOW + 1
KK = K * K
LP = 128                                         # lane-padded feature width
ROW0 = 8                                         # first valid row (sublane aligned)
HP = ((ROW0 + N_WORDS + WINDOW + 7) // 8) * 8    # padded conv-image height -> 24
EMB_ROWS = VOCAB * 8                             # one (8,128) tile per vocab entry

SMEM_SPEC = pl.BlockSpec(memory_space=pltpu.MemorySpace.SMEM)


# ------------------------------------------------------------ fused kernel --
def _cpi_kernel(conv_w_ref, conv_b_ref, words_ref,     # SMEM (full arrays)
                node_ref,                              # per-example VMEM block
                embed_ref,                             # VMEM-resident weights
                watt_c_ref, watt_p_ref, watt_b_ref,
                w0c_ref, w0p_ref, w0b_ref,
                wrest_w_ref, wrest_b_ref,
                wi_w_ref, wi_b_ref,
                o_ref,                                 # (8, LP) output block
                p_ref):                                # (HP, LP) scratch conv image
    f32 = jnp.float32
    b = pl.program_id(0)

    # ---- compound vector: global mean pool over atoms (graph_pooling='mean') -
    compound = jnp.sum(node_ref[...], axis=0, keepdims=True) * (1.0 / N_ATOMS)  # (1, DIM)

    # ---- build the padded conv image in VMEM scratch --------------------------
    # Zero the whole tile first: scratch is NOT zero-initialised and the conv
    # taps rely on a zero ring of width WINDOW around the valid window.
    p_ref[...] = jnp.zeros((HP, LP), f32)
    # Exact embedding gather: one aligned (8,128) tile per token id, row 0 of the
    # tile holds the word vector at lanes [WINDOW, WINDOW+DIM).
    for i in range(N_WORDS):
        row_start = pl.multiple_of(words_ref[b, i] * 8, 8)
        tile = embed_ref[pl.ds(row_start, 8), :]                    # (8, LP)
        p_ref[pl.ds(ROW0 + i, 1), :] = tile[0:1, :]

    # ---- conv chain, resident in p_ref ----------------------------------------
    for l in range(LAYER_CNN):
        w = [conv_w_ref[l, t] for t in range(KK)]   # hoisted SMEM scalar reads
        bias = conv_b_ref[l]
        acc = jnp.zeros((N_WORDS, DIM), f32)
        for di in range(K):
            for dj in range(K):
                acc = acc + w[di * K + dj] * p_ref[
                    pl.ds(ROW0 - WINDOW + di, N_WORDS), pl.ds(dj, DIM)]
        # write back into the valid window; the zero ring is untouched, so the
        # next layer's implicit zero padding is already in place.
        p_ref[pl.ds(ROW0, N_WORDS), pl.ds(WINDOW, DIM)] = jnp.maximum(acc + bias, 0.0)

    # ---- attention block -------------------------------------------------------
    wb = watt_b_ref[...]                                            # (1, LP)
    h = jnp.maximum(
        jnp.dot(compound, watt_c_ref[...], preferred_element_type=f32) + wb, 0.0)
    xs = p_ref[pl.ds(ROW0, N_WORDS), :]                             # only valid rows
    hs = jnp.maximum(
        jnp.dot(xs, watt_p_ref[...], preferred_element_type=f32) + wb, 0.0)
    # weights = tanh(h @ hs^T) as broadcast-mul + lane reduction (no transpose)
    wts = jnp.tanh(jnp.sum(hs * h, axis=1, keepdims=True))          # (N_WORDS, 1)
    protein = jnp.sum(wts * hs, axis=0, keepdims=True) * (1.0 / N_WORDS)  # (1, LP)

    # ---- output MLP + interaction head ----------------------------------------
    # Layer 0 consumes cat([compound, protein]); split into its compound /
    # protein halves so no lane-shifted concat is ever materialised.
    v = jnp.maximum(
        jnp.dot(compound, w0c_ref[...], preferred_element_type=f32)
        + jnp.dot(protein, w0p_ref[...], preferred_element_type=f32)
        + w0b_ref[...], 0.0)                                        # (1, LP)
    for j in range(LAYER_OUT - 1):
        v = jnp.maximum(
            jnp.dot(v, wrest_w_ref[j], preferred_element_type=f32) + wrest_b_ref[j],
            0.0)
    out = jnp.dot(v, wi_w_ref[...], preferred_element_type=f32) + wi_b_ref[...]  # (1, LP)
    o_ref[...] = jnp.broadcast_to(out, (8, LP))        # lane-dense, unmasked store


# ---------------------------------------------------- one-time weight prep --
def prepare_params(raw):
    """Transpose / lane-pad / place every Linear and the embedding table ONCE on
    the host so the kernel performs zero transposes and zero lane shuffles."""
    f32 = jnp.float32

    # Embedding table: one (8,128) tile per vocab entry; row 0 of the tile holds
    # embed[v] at lanes [WINDOW, WINDOW+DIM) -> matches the conv-image layout.
    embed_p = jnp.zeros((EMB_ROWS, LP), f32).at[
        0:EMB_ROWS:8, WINDOW:WINDOW + DIM].set(raw["embed"].astype(f32))

    # W_attention, compound path: inputs at lanes [0, DIM) (raw node features).
    watt_c_t = jnp.zeros((DIM, LP), f32).at[:, 0:DIM].set(raw["watt_w"].T)
    # W_attention, protein path: inputs at lanes [WINDOW, WINDOW+DIM) (conv image).
    watt_p_t = jnp.zeros((LP, LP), f32).at[WINDOW:WINDOW + DIM, 0:DIM].set(raw["watt_w"].T)
    watt_b = jnp.zeros((1, LP), f32).at[0, 0:DIM].set(raw["watt_b"].reshape(DIM))

    # W_out layer 0 split into compound / protein halves (cat order: compound first).
    w0_t = raw["wout_w"][0].T                              # (2*DIM, 2*DIM), rows = inputs
    w0c_t = jnp.zeros((DIM, LP), f32).at[:, 0:2 * DIM].set(w0_t[:DIM])
    w0p_t = jnp.zeros((LP, LP), f32).at[0:DIM, 0:2 * DIM].set(w0_t[DIM:])
    w0_b = jnp.zeros((1, LP), f32).at[0, 0:2 * DIM].set(raw["wout_b"][0].reshape(2 * DIM))

    wrest_t = jnp.zeros((LAYER_OUT - 1, LP, LP), f32)
    wrest_b = jnp.zeros((LAYER_OUT - 1, 1, LP), f32)
    for j in range(1, LAYER_OUT):
        wrest_t = wrest_t.at[j - 1, 0:2 * DIM, 0:2 * DIM].set(raw["wout_w"][j].T)
        wrest_b = wrest_b.at[j - 1, 0, 0:2 * DIM].set(raw["wout_b"][j].reshape(2 * DIM))

    wi_t = jnp.zeros((LP, LP), f32).at[0:2 * DIM, 0:2].set(raw["wi_w"].T)
    wi_b = jnp.zeros((1, LP), f32).at[0, 0:2].set(raw["wi_b"].reshape(2))

    return {
        "conv_w": raw["cnn_w"].astype(f32),                      # (LAYER_CNN, KK)
        "conv_b": raw["cnn_b"].reshape(LAYER_CNN).astype(f32),   # (LAYER_CNN,)
        "embed_p": embed_p,
        "watt_c_t": watt_c_t, "watt_p_t": watt_p_t, "watt_b": watt_b,
        "w0c_t": w0c_t, "w0p_t": w0p_t, "w0_b": w0_b,
        "wrest_t": wrest_t, "wrest_b": wrest_b,
        "wi_t": wi_t, "wi_b": wi_b,
    }


# ------------------------------------------------------------------ forward --
@jax.jit
def forward(prep, node_feats, words):
    """node_feats: (B, N_ATOMS, DIM) f32   -- MolGT per-atom embeddings stand-in.
       words     : (B, N_WORDS)     int32 -- protein token ids."""
    # TODO(synk): MolGT (self.ligand_encoder) is not defined in the provided
    # source; `node_feats` stands in for its per-atom output embeddings.
    B = node_feats.shape[0]
    const2 = lambda b: (0, 0)
    const3 = lambda b: (0, 0, 0)

    out = pl.pallas_call(
        _cpi_kernel,
        out_shape=jax.ShapeDtypeStruct((B, 8, LP), jnp.float32),
        grid=(B,),
        in_specs=[
            SMEM_SPEC,                                                # conv_w
            SMEM_SPEC,                                                # conv_b
            SMEM_SPEC,                                                # words (B, N_WORDS)
            pl.BlockSpec((None, N_ATOMS, DIM), lambda b: (b, 0, 0)),  # node feats
            pl.BlockSpec((EMB_ROWS, LP), const2),                     # embedding table
            pl.BlockSpec((DIM, LP), const2),                          # watt_c_t
            pl.BlockSpec((LP, LP), const2),                           # watt_p_t
            pl.BlockSpec((1, LP), const2),                            # watt_b
            pl.BlockSpec((DIM, LP), const2),                          # w0c_t
            pl.BlockSpec((LP, LP), const2),                           # w0p_t
            pl.BlockSpec((1, LP), const2),                            # w0_b
            pl.BlockSpec((LAYER_OUT - 1, LP, LP), const3),            # wrest_t
            pl.BlockSpec((LAYER_OUT - 1, 1, LP), const3),             # wrest_b
            pl.BlockSpec((LP, LP), const2),                           # wi_t
            pl.BlockSpec((1, LP), const2),                            # wi_b
        ],
        out_specs=pl.BlockSpec((None, 8, LP), lambda b: (b, 0, 0)),
        scratch_shapes=[pltpu.VMEM((HP, LP), jnp.float32)],
        compiler_params=pltpu.CompilerParams(dimension_semantics=("parallel",)),
    )(prep["conv_w"], prep["conv_b"], words,
      node_feats, prep["embed_p"],
      prep["watt_c_t"], prep["watt_p_t"], prep["watt_b"],
      prep["w0c_t"], prep["w0p_t"], prep["w0_b"],
      prep["wrest_t"], prep["wrest_b"],
      prep["wi_t"], prep["wi_b"])

    return out[:, 0, :2]                                  # (B, 2) interaction logits


# -------------------------------------------------------- pure-JAX reference --
@jax.jit
def _reference_forward(raw, node_feats, words):
    hi = lax.Precision.HIGHEST
    compound = jnp.mean(node_feats, axis=0, keepdims=True)          # (1, DIM)
    xs = raw["embed"][words]                                        # (N_WORDS, DIM)
    for l in range(LAYER_CNN):
        xp = jnp.pad(xs, ((WINDOW, WINDOW), (WINDOW, WINDOW)))
        acc = jnp.zeros_like(xs)
        for di in range(K):
            for dj in range(K):
                acc = acc + raw["cnn_w"][l, di * K + dj] * xp[di:di + N_WORDS, dj:dj + DIM]
        xs = jnp.maximum(acc + raw["cnn_b"][l, 0], 0.0)
    wt = raw["watt_w"].T
    h = jnp.maximum(jnp.dot(compound, wt, precision=hi) + raw["watt_b"], 0.0)
    hs = jnp.maximum(jnp.dot(xs, wt, precision=hi) + raw["watt_b"], 0.0)
    weights = jnp.tanh(jnp.dot(h, hs.T, precision=hi))              # (1, N_WORDS)
    protein = jnp.mean(weights.T * hs, axis=0, keepdims=True)       # (1, DIM)
    cat = jnp.concatenate([compound, protein], axis=1)              # (1, 2*DIM)
    for j in range(LAYER_OUT):
        cat = jnp.maximum(jnp.dot(cat, raw["wout_w"][j].T, precision=hi)
                          + raw["wout_b"][j], 0.0)
    return jnp.dot(cat, raw["wi_w"].T, precision=hi) + raw["wi_b"]


# --------------------------------------------------------------------- main --
if __name__ == "__main__":
    key = jax.random.PRNGKey(0)
    ks = jax.random.split(key, 12)

    raw = {
        # nn.Embedding(n_word, dim)
        "embed": 0.1 * jax.random.normal(ks[0], (VOCAB, DIM), jnp.float32),
        # layer_cnn x Conv2d(1, 1, 2*window+1, padding=window): (1,1,K,K) -> (K*K,), bias (1,)
        "cnn_w": 0.1 * jax.random.normal(ks[1], (LAYER_CNN, KK), jnp.float32),
        "cnn_b": 0.1 * jax.random.normal(ks[2], (LAYER_CNN, 1), jnp.float32),
        # W_attention: Linear(dim, dim)
        "watt_w": 0.1 * jax.random.normal(ks[3], (DIM, DIM), jnp.float32),
        "watt_b": 0.1 * jax.random.normal(ks[4], (1, DIM), jnp.float32),
        # W_out: layer_output x Linear(2*dim, 2*dim)
        "wout_w": 0.1 * jax.random.normal(ks[5], (LAYER_OUT, 2 * DIM, 2 * DIM), jnp.float32),
        "wout_b": 0.1 * jax.random.normal(ks[6], (LAYER_OUT, 1, 2 * DIM), jnp.float32),
        # W_interaction: Linear(2*dim, 2)
        "wi_w": 0.1 * jax.random.normal(ks[7], (2, 2 * DIM), jnp.float32),
        "wi_b": 0.1 * jax.random.normal(ks[8], (1, 2), jnp.float32),
    }
    params = prepare_params(raw)

    node_feats = jax.random.normal(ks[9], (BATCH, N_ATOMS, DIM), jnp.float32)   # MolGT stand-in
    words = jax.random.randint(ks[10], (BATCH, N_WORDS), 0, VOCAB, dtype=jnp.int32)

    out = forward(params, node_feats, words)
    jax.block_until_ready(out)
    assert out.shape == (BATCH, 2) and out.dtype == jnp.float32

    ref = jnp.stack([_reference_forward(raw, node_feats[i], words[i])[0]
                     for i in range(BATCH)])
    np.testing.assert_allclose(np.asarray(out), np.asarray(ref), rtol=5e-3, atol=5e-4)
    print("KERNEL_OK")
</pallas_src>

<mosaic_0001>
module attributes {stable_mosaic.version = 11 : i64} {
  func.func @_cpi_kernel(%arg0: i32, %arg1: memref<3x25xf32, #tpu.memory_space<smem>>, %arg2: memref<3xf32, #tpu.memory_space<smem>>, %arg3: memref<4x8xi32, #tpu.memory_space<smem>>, %arg4: memref<1x10x32xf32, #tpu.memory_space<vmem>>, %arg5: memref<160x128xf32, #tpu.memory_space<vmem>>, %arg6: memref<32x128xf32, #tpu.memory_space<vmem>>, %arg7: memref<128x128xf32, #tpu.memory_space<vmem>>, %arg8: memref<1x128xf32, #tpu.memory_space<vmem>>, %arg9: memref<32x128xf32, #tpu.memory_space<vmem>>, %arg10: memref<128x128xf32, #tpu.memory_space<vmem>>, %arg11: memref<1x128xf32, #tpu.memory_space<vmem>>, %arg12: memref<2x128x128xf32, #tpu.memory_space<vmem>>, %arg13: memref<2x1x128xf32, #tpu.memory_space<vmem>>, %arg14: memref<128x128xf32, #tpu.memory_space<vmem>>, %arg15: memref<1x128xf32, #tpu.memory_space<vmem>>, %arg16: memref<1x8x128xf32, #tpu.memory_space<vmem>>, %arg17: memref<24x128xf32, #tpu.memory_space<vmem>>) attributes {dimension_semantics = [#tpu.dimension_semantics<parallel>], iteration_bounds = array<i64: 4>, scalar_prefetch = 0 : i64, scratch_operands = 1 : i64, tpu.core_type = #tpu.core_type<tc>, window_params = [{transform_indices = @transform_0, window_bounds = array<i64: 3, 25>}, {transform_indices = @transform_1, window_bounds = array<i64: 3>}, {transform_indices = @transform_2, window_bounds = array<i64: 4, 8>}, {transform_indices = @transform_3, window_bounds = array<i64: 1, 10, 32>}, {pipeline_mode = #tpu.pipeline_mode<synchronous>, transform_indices = @transform_4, window_bounds = array<i64: 160, 128>}, {pipeline_mode = #tpu.pipeline_mode<synchronous>, transform_indices = @transform_5, window_bounds = array<i64: 32, 128>}, {pipeline_mode = #tpu.pipeline_mode<synchronous>, transform_indices = @transform_6, window_bounds = array<i64: 128, 128>}, {pipeline_mode = #tpu.pipeline_mode<synchronous>, transform_indices = @transform_7, window_bounds = array<i64: 1, 128>}, {pipeline_mode = #tpu.pipeline_mode<synchronous>, transform_indices = @transform_8, window_bounds = array<i64: 32, 128>}, {pipeline_mode = #tpu.pipeline_mode<synchronous>, transform_indices = @transform_9, window_bounds = array<i64: 128, 128>}, {pipeline_mode = #tpu.pipeline_mode<synchronous>, transform_indices = @transform_10, window_bounds = array<i64: 1, 128>}, {pipeline_mode = #tpu.pipeline_mode<synchronous>, transform_indices = @transform_11, window_bounds = array<i64: 2, 128, 128>}, {pipeline_mode = #tpu.pipeline_mode<synchronous>, transform_indices = @transform_12, window_bounds = array<i64: 2, 1, 128>}, {pipeline_mode = #tpu.pipeline_mode<synchronous>, transform_indices = @transform_13, window_bounds = array<i64: 128, 128>}, {pipeline_mode = #tpu.pipeline_mode<synchronous>, transform_indices = @transform_14, window_bounds = array<i64: 1, 128>}, {transform_indices = @transform_15, window_bounds = array<i64: 1, 8, 128>}]} {
    %c0 = arith.constant 0 : index
    %c0_0 = arith.constant 0 : index
    %c0_1 = arith.constant 0 : index
    %0 = vector.load %arg4[%c0, %c0_0, %c0_1] : memref<1x10x32xf32, #tpu.memory_space<vmem>>, vector<1x10x32xf32>
    %1 = vector.shape_cast %0 : vector<1x10x32xf32> to vector<10x32xf32>
    %cst = arith.constant dense<0.000000e+00> : vector<32xf32>
    %2 = vector.multi_reduction <add>, %1, %cst [0] : vector<10x32xf32> to vector<32xf32>
    %3 = vector.shape_cast %2 : vector<32xf32> to vector<1x32xf32>
    %cst_2 = arith.constant 1.000000e-01 : f32
    %4 = vector.broadcast %cst_2 : f32 to vector<1x32xf32>
    %5 = arith.mulf %3, %4 : vector<1x32xf32>
    %cst_3 = arith.constant 0.000000e+00 : f32
    %6 = vector.broadcast %cst_3 : f32 to vector<24x128xf32>
    %c0_4 = arith.constant 0 : index
    %c0_5 = arith.constant 0 : index
    %7 = vector.load %arg17[%c0_4, %c0_5] : memref<24x128xf32, #tpu.memory_space<vmem>>, vector<24x128xf32>
    tpu.vector_store %arg17[%c0_4, %c0_5], %6 {strides = array<i32>} : memref<24x128xf32, #tpu.memory_space<vmem>>, vector<24x128xf32>,
    %8 = arith.index_cast %arg0 : i32 to index
    %c0_6 = arith.constant 0 : index
    %9 = memref.load %arg3[%8, %c0_6] : memref<4x8xi32, #tpu.memory_space<smem>>
    %c8_i32 = arith.constant 8 : i32
    %10 = arith.muli %9, %c8_i32 : i32
    %11 = tpu.assume_multiple %10, 8 : i32
    %12 = arith.index_cast %11 : i32 to index
    %c0_7 = arith.constant 0 : index
    %13 = vector.load %arg5[%12, %c0_7] : memref<160x128xf32, #tpu.memory_space<vmem>>, vector<8x128xf32>
    %14 = vector.extract_strided_slice %13 {offsets = [0, 0], sizes = [1, 128], strides = [1, 1]} : vector<8x128xf32> to vector<1x128xf32>
    %c8 = arith.constant 8 : index
    %c0_8 = arith.constant 0 : index
    %15 = vector.load %arg17[%c8, %c0_8] : memref<24x128xf32, #tpu.memory_space<vmem>>, vector<1x128xf32>
    tpu.vector_store %arg17[%c8, %c0_8], %14 {strides = array<i32>} : memref<24x128xf32, #tpu.memory_space<vmem>>, vector<1x128xf32>,
    %16 = arith.index_cast %arg0 : i32 to index
    %c1 = arith.constant 1 : index
    %17 = memref.load %arg3[%16, %c1] : memref<4x8xi32, #tpu.memory_space<smem>>
    %c8_i32_9 = arith.constant 8 : i32
    %18 = arith.muli %17, %c8_i32_9 : i32
    %19 = tpu.assume_multiple %18, 8 : i32
    %20 = arith.index_cast %19 : i32 to index
    %c0_10 = arith.constant 0 : index
    %21 = vector.load %arg5[%20, %c0_10] : memref<160x128xf32, #tpu.memory_space<vmem>>, vector<8x128xf32>
    %22 = vector.extract_strided_slice %21 {offsets = [0, 0], sizes = [1, 128], strides = [1, 1]} : vector<8x128xf32> to vector<1x128xf32>
    %c9 = arith.constant 9 : index
    %c0_11 = arith.constant 0 : index
    %23 = vector.load %arg17[%c9, %c0_11] : memref<24x128xf32, #tpu.memory_space<vmem>>, vector<1x128xf32>
    tpu.vector_store %arg17[%c9, %c0_11], %22 {strides = array<i32>} : memref<24x128xf32, #tpu.memory_space<vmem>>, vector<1x128xf32>,
    %24 = arith.index_cast %arg0 : i32 to index
    %c2 = arith.constant 2 : index
    %25 = memref.load %arg3[%24, %c2] : memref<4x8xi32, #tpu.memory_space<smem>>
    %c8_i32_12 = arith.constant 8 : i32
    %26 = arith.muli %25, %c8_i32_12 : i32
    %27 = tpu.assume_multiple %26, 8 : i32
    %28 = arith.index_cast %27 : i32 to index
    %c0_13 = arith.constant 0 : index
    %29 = vector.load %arg5[%28, %c0_13] : memref<160x128xf32, #tpu.memory_space<vmem>>, vector<8x128xf32>
    %30 = vector.extract_strided_slice %29 {offsets = [0, 0], sizes = [1, 128], strides = [1, 1]} : vector<8x128xf32> to vector<1x128xf32>
    %c10 = arith.constant 10 : index
    %c0_14 = arith.constant 0 : index
    %31 = vector.load %arg17[%c10, %c0_14] : memref<24x128xf32, #tpu.memory_space<vmem>>, vector<1x128xf32>
    tpu.vector_store %arg17[%c10, %c0_14], %30 {strides = array<i32>} : memref<24x128xf32, #tpu.memory_space<vmem>>, vector<1x128xf32>,
    %32 = arith.index_cast %arg0 : i32 to index
    %c3 = arith.constant 3 : index
    %33 = memref.load %arg3[%32, %c3] : memref<4x8xi32, #tpu.memory_space<smem>>
    %c8_i32_15 = arith.constant 8 : i32
    %34 = arith.muli %33, %c8_i32_15 : i32
    %35 = tpu.assume_multiple %34, 8 : i32
    %36 = arith.index_cast %35 : i32 to index
    %c0_16 = arith.constant 0 : index
    %37 = vector.load %arg5[%36, %c0_16] : memref<160x128xf32, #tpu.memory_space<vmem>>, vector<8x128xf32>
    %38 = vector.extract_strided_slice %37 {offsets = [0, 0], sizes = [1, 128], strides = [1, 1]} : vector<8x128xf32> to vector<1x128xf32>
    %c11 = arith.constant 11 : index
    %c0_17 = arith.constant 0 : index
    %39 = vector.load %arg17[%c11, %c0_17] : memref<24x128xf32, #tpu.memory_space<vmem>>, vector<1x128xf32>
    tpu.vector_store %arg17[%c11, %c0_17], %38 {strides = array<i32>} : memref<24x128xf32, #tpu.memory_space<vmem>>, vector<1x128xf32>,
    %40 = arith.index_cast %arg0 : i32 to index
    %c4 = arith.constant 4 : index
    %41 = memref.load %arg3[%40, %c4] : memref<4x8xi32, #tpu.memory_space<smem>>
    %c8_i32_18 = arith.constant 8 : i32
    %42 = arith.muli %41, %c8_i32_18 : i32
    %43 = tpu.assume_multiple %42, 8 : i32
    %44 = arith.index_cast %43 : i32 to index
    %c0_19 = arith.constant 0 : index
    %45 = vector.load %arg5[%44, %c0_19] : memref<160x128xf32, #tpu.memory_space<vmem>>, vector<8x128xf32>
    %46 = vector.extract_strided_slice %45 {offsets = [0, 0], sizes = [1, 128], strides = [1, 1]} : vector<8x128xf32> to vector<1x128xf32>
    %c12 = arith.constant 12 : index
    %c0_20 = arith.constant 0 : index
    %47 = vector.load %arg17[%c12, %c0_20] : memref<24x128xf32, #tpu.memory_space<vmem>>, vector<1x128xf32>
    tpu.vector_store %arg17[%c12, %c0_20], %46 {strides = array<i32>} : memref<24x128xf32, #tpu.memory_space<vmem>>, vector<1x128xf32>,
    %48 = arith.index_cast %arg0 : i32 to index
    %c5 = arith.constant 5 : index
    %49 = memref.load %arg3[%48, %c5] : memref<4x8xi32, #tpu.memory_space<smem>>
    %c8_i32_21 = arith.constant 8 : i32
    %50 = arith.muli %49, %c8_i32_21 : i32
    %51 = tpu.assume_multiple %50, 8 : i32
    %52 = arith.index_cast %51 : i32 to index
    %c0_22 = arith.constant 0 : index
    %53 = vector.load %arg5[%52, %c0_22] : memref<160x128xf32, #tpu.memory_space<vmem>>, vector<8x128xf32>
    %54 = vector.extract_strided_slice %53 {offsets = [0, 0], sizes = [1, 128], strides = [1, 1]} : vector<8x128xf32> to vector<1x128xf32>
    %c13 = arith.constant 13 : index
    %c0_23 = arith.constant 0 : index
    %55 = vector.load %arg17[%c13, %c0_23] : memref<24x128xf32, #tpu.memory_space<vmem>>, vector<1x128xf32>
    tpu.vector_store %arg17[%c13, %c0_23], %54 {strides = array<i32>} : memref<24x128xf32, #tpu.memory_space<vmem>>, vector<1x128xf32>,
    %56 = arith.index_cast %arg0 : i32 to index
    %c6 = arith.constant 6 : index
    %57 = memref.load %arg3[%56, %c6] : memref<4x8xi32, #tpu.memory_space<smem>>
    %c8_i32_24 = arith.constant 8 : i32
    %58 = arith.muli %57, %c8_i32_24 : i32
    %59 = tpu.assume_multiple %58, 8 : i32
    %60 = arith.index_cast %59 : i32 to index
    %c0_25 = arith.constant 0 : index
    %61 = vector.load %arg5[%60, %c0_25] : memref<160x128xf32, #tpu.memory_space<vmem>>, vector<8x128xf32>
    %62 = vector.extract_strided_slice %61 {offsets = [0, 0], sizes = [1, 128], strides = [1, 1]} : vector<8x128xf32> to vector<1x128xf32>
    %c14 = arith.constant 14 : index
    %c0_26 = arith.constant 0 : index
    %63 = vector.load %arg17[%c14, %c0_26] : memref<24x128xf32, #tpu.memory_space<vmem>>, vector<1x128xf32>
    tpu.vector_store %arg17[%c14, %c0_26], %62 {strides = array<i32>} : memref<24x128xf32, #tpu.memory_space<vmem>>, vector<1x128xf32>,
    %64 = arith.index_cast %arg0 : i32 to index
    %c7 = arith.constant 7 : index
    %65 = memref.load %arg3[%64, %c7] : memref<4x8xi32, #tpu.memory_space<smem>>
    %c8_i32_27 = arith.constant 8 : i32
    %66 = arith.muli %65, %c8_i32_27 : i32
    %67 = tpu.assume_multiple %66, 8 : i32
    %68 = arith.index_cast %67 : i32 to index
    %c0_28 = arith.constant 0 : index
    %69 = vector.load %arg5[%68, %c0_28] : memref<160x128xf32, #tpu.memory_space<vmem>>, vector<8x128xf32>
    %70 = vector.extract_strided_slice %69 {offsets = [0, 0], sizes = [1, 128], strides = [1, 1]} : vector<8x128xf32> to vector<1x128xf32>
    %c15 = arith.constant 15 : index
    %c0_29 = arith.constant 0 : index
    %71 = vector.load %arg17[%c15, %c0_29] : memref<24x128xf32, #tpu.memory_space<vmem>>, vector<1x128xf32>
    tpu.vector_store %arg17[%c15, %c0_29], %70 {strides = array<i32>} : memref<24x128xf32, #tpu.memory_space<vmem>>, vector<1x128xf32>,
    %c0_30 = arith.constant 0 : index
    %c0_31 = arith.constant 0 : index
    %72 = memref.load %arg1[%c0_30, %c0_31] : memref<3x25xf32, #tpu.memory_space<smem>>
    %c0_32 = arith.constant 0 : index
    %c1_33 = arith.constant 1 : index
    %73 = memref.load %arg1[%c0_32, %c1_33] : memref<3x25xf32, #tpu.memory_space<smem>>
    %c0_34 = arith.constant 0 : index
    %c2_35 = arith.constant 2 : index
    %74 = memref.load %arg1[%c0_34, %c2_35] : memref<3x25xf32, #tpu.memory_space<smem>>
    %c0_36 = arith.constant 0 : index
    %c3_37 = arith.constant 3 : index
    %75 = memref.load %arg1[%c0_36, %c3_37] : memref<3x25xf32, #tpu.memory_space<smem>>
    %c0_38 = arith.constant 0 : index
    %c4_39 = arith.constant 4 : index
    %76 = memref.load %arg1[%c0_38, %c4_39] : memref<3x25xf32, #tpu.memory_space<smem>>
    %c0_40 = arith.constant 0 : index
    %c5_41 = arith.constant 5 : index
    %77 = memref.load %arg1[%c0_40, %c5_41] : memref<3x25xf32, #tpu.memory_space<smem>>
    %c0_42 = arith.constant 0 : index
    %c6_43 = arith.constant 6 : index
    %78 = memref.load %arg1[%c0_42, %c6_43] : memref<3x25xf32, #tpu.memory_space<smem>>
    %c0_44 = arith.constant 0 : index
    %c7_45 = arith.constant 7 : index
    %79 = memref.load %arg1[%c0_44, %c7_45] : memref<3x25xf32, #tpu.memory_space<smem>>
    %c0_46 = arith.constant 0 : index
    %c8_47 = arith.constant 8 : index
    %80 = memref.load %arg1[%c0_46, %c8_47] : memref<3x25xf32, #tpu.memory_space<smem>>
    %c0_48 = arith.constant 0 : index
    %c9_49 = arith.constant 9 : index
    %81 = memref.load %arg1[%c0_48, %c9_49] : memref<3x25xf32, #tpu.memory_space<smem>>
    %c0_50 = arith.constant 0 : index
    %c10_51 = arith.constant 10 : index
    %82 = memref.load %arg1[%c0_50, %c10_51] : memref<3x25xf32, #tpu.memory_space<smem>>
    %c0_52 = arith.constant 0 : index
    %c11_53 = arith.constant 11 : index
    %83 = memref.load %arg1[%c0_52, %c11_53] : memref<3x25xf32, #tpu.memory_space<smem>>
    %c0_54 = arith.constant 0 : index
    %c12_55 = arith.constant 12 : index
    %84 = memref.load %arg1[%c0_54, %c12_55] : memref<3x25xf32, #tpu.memory_space<smem>>
    %c0_56 = arith.constant 0 : index
    %c13_57 = arith.constant 13 : index
    %85 = memref.load %arg1[%c0_56, %c13_57] : memref<3x25xf32, #tpu.memory_space<smem>>
    %c0_58 = arith.constant 0 : index
    %c14_59 = arith.constant 14 : index
    %86 = memref.load %arg1[%c0_58, %c14_59] : memref<3x25xf32, #tpu.memory_space<smem>>
    %c0_60 = arith.constant 0 : index
    %c15_61 = arith.constant 15 : index
    %87 = memref.load %arg1[%c0_60, %c15_61] : memref<3x25xf32, #tpu.memory_space<smem>>
    %c0_62 = arith.constant 0 : index
    %c16 = arith.constant 16 : index
    %88 = memref.load %arg1[%c0_62, %c16] : memref<3x25xf32, #tpu.memory_space<smem>>
    %c0_63 = arith.constant 0 : index
    %c17 = arith.constant 17 : index
    %89 = memref.load %arg1[%c0_63, %c17] : memref<3x25xf32, #tpu.memory_space<smem>>
    %c0_64 = arith.constant 0 : index
    %c18 = arith.constant 18 : index
    %90 = memref.load %arg1[%c0_64, %c18] : memref<3x25xf32, #tpu.memory_space<smem>>
    %c0_65 = arith.constant 0 : index
    %c19 = arith.constant 19 : index
    %91 = memref.load %arg1[%c0_65, %c19] : memref<3x25xf32, #tpu.memory_space<smem>>
    %c0_66 = arith.constant 0 : index
    %c20 = arith.constant 20 : index
    %92 = memref.load %arg1[%c0_66, %c20] : memref<3x25xf32, #tpu.memory_space<smem>>
    %c0_67 = arith.constant 0 : index
    %c21 = arith.constant 21 : index
    %93 = memref.load %arg1[%c0_67, %c21] : memref<3x25xf32, #tpu.memory_space<smem>>
    %c0_68 = arith.constant 0 : index
    %c22 = arith.constant 22 : index
    %94 = memref.load %arg1[%c0_68, %c22] : memref<3x25xf32, #tpu.memory_space<smem>>
    %c0_69 = arith.constant 0 : index
    %c23 = arith.constant 23 : index
    %95 = memref.load %arg1[%c0_69, %c23] : memref<3x25xf32, #tpu.memory_space<smem>>
    %c0_70 = arith.constant 0 : index
    %c24 = arith.constant 24 : index
    %96 = memref.load %arg1[%c0_70, %c24] : memref<3x25xf32, #tpu.memory_space<smem>>
    %c0_71 = arith.constant 0 : index
    %97 = memref.load %arg2[%c0_71] : memref<3xf32, #tpu.memory_space<smem>>
    %cst_72 = arith.constant 0.000000e+00 : f32
    %98 = vector.broadcast %cst_72 : f32 to vector<8x32xf32>
    %c6_73 = arith.constant 6 : index
    %c0_74 = arith.constant 0 : index
    %99 = vector.load %arg17[%c6_73, %c0_74] : memref<24x128xf32, #tpu.memory_space<vmem>>, vector<8x32xf32>
    %100 = vector.broadcast %72 : f32 to vector<8x32xf32>
    %101 = arith.mulf %100, %99 : vector<8x32xf32>
    %102 = arith.addf %98, %101 : vector<8x32xf32>
    %c6_75 = arith.constant 6 : index
    %c1_76 = arith.constant 1 : index
    %103 = vector.load %arg17[%c6_75, %c1_76] : memref<24x128xf32, #tpu.memory_space<vmem>>, vector<8x32xf32>
    %104 = vector.broadcast %73 : f32 to vector<8x32xf32>
    %105 = arith.mulf %104, %103 : vector<8x32xf32>
    %106 = arith.addf %102, %105 : vector<8x32xf32>
    %c6_77 = arith.constant 6 : index
    %c2_78 = arith.constant 2 : index
    %107 = vector.load %arg17[%c6_77, %c2_78] : memref<24x128xf32, #tpu.memory_space<vmem>>, vector<8x32xf32>
    %108 = vector.broadcast %74 : f32 to vector<8x32xf32>
    %109 = arith.mulf %108, %107 : vector<8x32xf32>
    %110 = arith.addf %106, %109 : vector<8x32xf32>
    %c6_79 = arith.constant 6 : index
    %c3_80 = arith.constant 3 : index
    %111 = vector.load %arg17[%c6_79, %c3_80] : memref<24x128xf32, #tpu.memory_space<vmem>>, vector<8x32xf32>
    %112 = vector.broadcast %75 : f32 to vector<8x32xf32>
    %113 = arith.mulf %112, %111 : vector<8x32xf32>
    %114 = arith.addf %110, %113 : vector<8x32xf32>
    %c6_81 = arith.constant 6 : index
    %c4_82 = arith.constant 4 : index
    %115 = vector.load %arg17[%c6_81, %c4_82] : memref<24x128xf32, #tpu.memory_space<vmem>>, vector<8x32xf32>
    %116 = vector.broadcast %76 : f32 to vector<8x32xf32>
    %117 = arith.mulf %116, %115 : vector<8x32xf32>
    %118 = arith.addf %114, %117 : vector<8x32xf32>
    %c7_83 = arith.constant 7 : index
    %c0_84 = arith.constant 0 : index
    %119 = vector.load %arg17[%c7_83, %c0_84] : memref<24x128xf32, #tpu.memory_space<vmem>>, vector<8x32xf32>
    %120 = vector.broadcast %77 : f32 to vector<8x32xf32>
    %121 = arith.mulf %120, %119 : vector<8x32xf32>
    %122 = arith.addf %118, %121 : vector<8x32xf32>
    %c7_85 = arith.constant 7 : index
    %c1_86 = arith.constant 1 : index
    %123 = vector.load %arg17[%c7_85, %c1_86] : memref<24x128xf32, #tpu.memory_space<vmem>>, vector<8x32xf32>
    %124 = vector.broadcast %78 : f32 to vector<8x32xf32>
    %125 = arith.mulf %124, %123 : vector<8x32xf32>
    %126 = arith.addf %122, %125 : vector<8x32xf32>
    %c7_87 = arith.constant 7 : index
    %c2_88 = arith.constant 2 : index
    %127 = vector.load %arg17[%c7_87, %c2_88] : memref<24x128xf32, #tpu.memory_space<vmem>>, vector<8x32xf32>
    %128 = vector.broadcast %79 : f32 to vector<8x32xf32>
    %129 = arith.mulf %128, %127 : vector<8x32xf32>
    %130 = arith.addf %126, %129 : vector<8x32xf32>
    %c7_89 = arith.constant 7 : index
    %c3_90 = arith.constant 3 : index
    %131 = vector.load %arg17[%c7_89, %c3_90] : memref<24x128xf32, #tpu.memory_space<vmem>>, vector<8x32xf32>
    %132 = vector.broadcast %80 : f32 to vector<8x32xf32>
    %133 = arith.mulf %132, %131 : vector<8x32xf32>
    %134 = arith.addf %130, %133 : vector<8x32xf32>
    %c7_91 = arith.constant 7 : index
    %c4_92 = arith.constant 4 : index
    %135 = vector.load %arg17[%c7_91, %c4_92] : memref<24x128xf32, #tpu.memory_space<vmem>>, vector<8x32xf32>
    %136 = vector.broadcast %81 : f32 to vector<8x32xf32>
    %137 = arith.mulf %136, %135 : vector<8x32xf32>
    %138 = arith.addf %134, %137 : vector<8x32xf32>
    %c8_93 = arith.constant 8 : index
    %c0_94 = arith.constant 0 : index
    %139 = vector.load %arg17[%c8_93, %c0_94] : memref<24x128xf32, #tpu.memory_space<vmem>>, vector<8x32xf32>
    %140 = vector.broadcast %82 : f32 to vector<8x32xf32>
    %141 = arith.mulf %140, %139 : vector<8x32xf32>
    %142 = arith.addf %138, %141 : vector<8x32xf32>
    %c8_95 = arith.constant 8 : index
    %c1_96 = arith.constant 1 : index
    %143 = vector.load %arg17[%c8_95, %c1_96] : memref<24x128xf32, #tpu.memory_space<vmem>>, vector<8x32xf32>
    %144 = vector.broadcast %83 : f32 to vector<8x32xf32>
    %145 = arith.mulf %144, %143 : vector<8x32xf32>
    %146 = arith.addf %142, %145 : vector<8x32xf32>
    %c8_97 = arith.constant 8 : index
    %c2_98 = arith.constant 2 : index
    %147 = vector.load %arg17[%c8_97, %c2_98] : memref<24x128xf32, #tpu.memory_space<vmem>>, vector<8x32xf32>
    %148 = vector.broadcast %84 : f32 to vector<8x32xf32>
    %149 = arith.mulf %148, %147 : vector<8x32xf32>
    %150 = arith.addf %146, %149 : vector<8x32xf32>
    %c8_99 = arith.constant 8 : index
    %c3_100 = arith.constant 3 : index
    %151 = vector.load %arg17[%c8_99, %c3_100] : memref<24x128xf32, #tpu.memory_space<vmem>>, vector<8x32xf32>
    %152 = vector.broadcast %85 : f32 to vector<8x32xf32>
    %153 = arith.mulf %152, %151 : vector<8x32xf32>
    %154 = arith.addf %150, %153 : vector<8x32xf32>
    %c8_101 = arith.constant 8 : index
    %c4_102 = arith.constant 4 : index
    %155 = vector.load %arg17[%c8_101, %c4_102] : memref<24x128xf32, #tpu.memory_space<vmem>>, vector<8x32xf32>
    %156 = vector.broadcast %86 : f32 to vector<8x32xf32>
    %157 = arith.mulf %156, %155 : vector<8x32xf32>
    %158 = arith.addf %154, %157 : vector<8x32xf32>
    %c9_103 = arith.constant 9 : index
    %c0_104 = arith.constant 0 : index
    %159 = vector.load %arg17[%c9_103, %c0_104] : memref<24x128xf32, #tpu.memory_space<vmem>>, vector<8x32xf32>
    %160 = vector.broadcast %87 : f32 to vector<8x32xf32>
    %161 = arith.mulf %160, %159 : vector<8x32xf32>
    %162 = arith.addf %158, %161 : vector<8x32xf32>
    %c9_105 = arith.constant 9 : index
    %c1_106 = arith.constant 1 : index
    %163 = vector.load %arg17[%c9_105, %c1_106] : memref<24x128xf32, #tpu.memory_space<vmem>>, vector<8x32xf32>
    %164 = vector.broadcast %88 : f32 to vector<8x32xf32>
    %165 = arith.mulf %164, %163 : vector<8x32xf32>
    %166 = arith.addf %162, %165 : vector<8x32xf32>
    %c9_107 = arith.constant 9 : index
    %c2_108 = arith.constant 2 : index
    %167 = vector.load %arg17[%c9_107, %c2_108] : memref<24x128xf32, #tpu.memory_space<vmem>>, vector<8x32xf32>
    %168 = vector.broadcast %89 : f32 to vector<8x32xf32>
    %169 = arith.mulf %168, %167 : vector<8x32xf32>
    %170 = arith.addf %166, %169 : vector<8x32xf32>
    %c9_109 = arith.constant 9 : index
    %c3_110 = arith.constant 3 : index
    %171 = vector.load %arg17[%c9_109, %c3_110] : memref<24x128xf32, #tpu.memory_space<vmem>>, vector<8x32xf32>
    %172 = vector.broadcast %90 : f32 to vector<8x32xf32>
    %173 = arith.mulf %172, %171 : vector<8x32xf32>
    %174 = arith.addf %170, %173 : vector<8x32xf32>
    %c9_111 = arith.constant 9 : index
    %c4_112 = arith.constant 4 : index
    %175 = vector.load %arg17[%c9_111, %c4_112] : memref<24x128xf32, #tpu.memory_space<vmem>>, vector<8x32xf32>
    %176 = vector.broadcast %91 : f32 to vector<8x32xf32>
    %177 = arith.mulf %176, %175 : vector<8x32xf32>
    %178 = arith.addf %174, %177 : vector<8x32xf32>
    %c10_113 = arith.constant 10 : index
    %c0_114 = arith.constant 0 : index
    %179 = vector.load %arg17[%c10_113, %c0_114] : memref<24x128xf32, #tpu.memory_space<vmem>>, vector<8x32xf32>
    %180 = vector.broadcast %92 : f32 to vector<8x32xf32>
    %181 = arith.mulf %180, %179 : vector<8x32xf32>
    %182 = arith.addf %178, %181 : vector<8x32xf32>
    %c10_115 = arith.constant 10 : index
    %c1_116 = arith.constant 1 : index
    %183 = vector.load %arg17[%c10_115, %c1_116] : memref<24x128xf32, #tpu.memory_space<vmem>>, vector<8x32xf32>
    %184 = vector.broadcast %93 : f32 to vector<8x32xf32>
    %185 = arith.mulf %184, %183 : vector<8x32xf32>
    %186 = arith.addf %182, %185 : vector<8x32xf32>
    %c10_117 = arith.constant 10 : index
    %c2_118 = arith.constant 2 : index
    %187 = vector.load %arg17[%c10_117, %c2_118] : memref<24x128xf32, #tpu.memory_space<vmem>>, vector<8x32xf32>
    %188 = vector.broadcast %94 : f32 to vector<8x32xf32>
    %189 = arith.mulf %188, %187 : vector<8x32xf32>
    %190 = arith.addf %186, %189 : vector<8x32xf32>
    %c10_119 = arith.constant 10 : index
    %c3_120 = arith.constant 3 : index
    %191 = vector.load %arg17[%c10_119, %c3_120] : memref<24x128xf32, #tpu.memory_space<vmem>>, vector<8x32xf32>
    %192 = vector.broadcast %95 : f32 to vector<8x32xf32>
    %193 = arith.mulf %192, %191 : vector<8x32xf32>
    %194 = arith.addf %190, %193 : vector<8x32xf32>
    %c10_121 = arith.constant 10 : index
    %c4_122 = arith.constant 4 : index
    %195 = vector.load %arg17[%c10_121, %c4_122] : memref<24x128xf32, #tpu.memory_space<vmem>>, vector<8x32xf32>
    %196 = vector.broadcast %96 : f32 to vector<8x32xf32>
    %197 = arith.mulf %196, %195 : vector<8x32xf32>
    %198 = arith.addf %194, %197 : vector<8x32xf32>
    %199 = vector.broadcast %97 : f32 to vector<8x32xf32>
    %200 = arith.addf %198, %199 : vector<8x32xf32>
    %cst_123 = arith.constant 0.000000e+00 : f32
    %201 = vector.broadcast %cst_123 : f32 to vector<8x32xf32>
    %202 = arith.maximumf %200, %201 : vector<8x32xf32>
    %c8_124 = arith.constant 8 : index
    %c2_125 = arith.constant 2 : index
    %203 = vector.load %arg17[%c8_124, %c2_125] : memref<24x128xf32, #tpu.memory_space<vmem>>, vector<8x32xf32>
    tpu.vector_store %arg17[%c8_124, %c2_125], %202 {strides = array<i32>} : memref<24x128xf32, #tpu.memory_space<vmem>>, vector<8x32xf32>,
    %c1_126 = arith.constant 1 : index
    %c0_127 = arith.constant 0 : index
    %204 = memref.load %arg1[%c1_126, %c0_127] : memref<3x25xf32, #tpu.memory_space<smem>>
    %c1_128 = arith.constant 1 : index
    %c1_129 = arith.constant 1 : index
    %205 = memref.load %arg1[%c1_128, %c1_129] : memref<3x25xf32, #tpu.memory_space<smem>>
    %c1_130 = arith.constant 1 : index
    %c2_131 = arith.constant 2 : index
    %206 = memref.load %arg1[%c1_130, %c2_131] : memref<3x25xf32, #tpu.memory_space<smem>>
    %c1_132 = arith.constant 1 : index
    %c3_133 = arith.constant 3 : index
    %207 = memref.load %arg1[%c1_132, %c3_133] : memref<3x25xf32, #tpu.memory_space<smem>>
    %c1_134 = arith.constant 1 : index
    %c4_135 = arith.constant 4 : index
    %208 = memref.load %arg1[%c1_134, %c4_135] : memref<3x25xf32, #tpu.memory_space<smem>>
    %c1_136 = arith.constant 1 : index
    %c5_137 = arith.constant 5 : index
    %209 = memref.load %arg1[%c1_136, %c5_137] : memref<3x25xf32, #tpu.memory_space<smem>>
    %c1_138 = arith.constant 1 : index
    %c6_139 = arith.constant 6 : index
    %210 = memref.load %arg1[%c1_138, %c6_139] : memref<3x25xf32, #tpu.memory_space<smem>>
    %c1_140 = arith.constant 1 : index
    %c7_141 = arith.constant 7 : index
    %211 = memref.load %arg1[%c1_140, %c7_141] : memref<3x25xf32, #tpu.memory_space<smem>>
    %c1_142 = arith.constant 1 : index
    %c8_143 = arith.constant 8 : index
    %212 = memref.load %arg1[%c1_142, %c8_143] : memref<3x25xf32, #tpu.memory_space<smem>>
    %c1_144 = arith.constant 1 : index
    %c9_145 = arith.constant 9 : index
    %213 = memref.load %arg1[%c1_144, %c9_145] : memref<3x25xf32, #tpu.memory_space<smem>>
    %c1_146 = arith.constant 1 : index
    %c10_147 = arith.constant 10 : index
    %214 = memref.load %arg1[%c1_146, %c10_147] : memref<3x25xf32, #tpu.memory_space<smem>>
    %c1_148 = arith.constant 1 : index
    %c11_149 = arith.constant 11 : index
    %215 = memref.load %arg1[%c1_148, %c11_149] : memref<3x25xf32, #tpu.memory_space<smem>>
    %c1_150 = arith.constant 1 : index
    %c12_151 = arith.constant 12 : index
    %216 = memref.load %arg1[%c1_150, %c12_151] : memref<3x25xf32, #tpu.memory_space<smem>>
    %c1_152 = arith.constant 1 : index
    %c13_153 = arith.constant 13 : index
    %217 = memref.load %arg1[%c1_152, %c13_153] : memref<3x25xf32, #tpu.memory_space<smem>>
    %c1_154 = arith.constant 1 : index
    %c14_155 = arith.constant 14 : index
    %218 = memref.load %arg1[%c1_154, %c14_155] : memref<3x25xf32, #tpu.memory_space<smem>>
    %c1_156 = arith.constant 1 : index
    %c15_157 = arith.constant 15 : index
    %219 = memref.load %arg1[%c1_156, %c15_157] : memref<3x25xf32, #tpu.memory_space<smem>>
    %c1_158 = arith.constant 1 : index
    %c16_159 = arith.constant 16 : index
    %220 = memref.load %arg1[%c1_158, %c16_159] : memref<3x25xf32, #tpu.memory_space<smem>>
    %c1_160 = arith.constant 1 : index
    %c17_161 = arith.constant 17 : index
    %221 = memref.load %arg1[%c1_160, %c17_161] : memref<3x25xf32, #tpu.memory_space<smem>>
    %c1_162 = arith.constant 1 : index
    %c18_163 = arith.constant 18 : index
    %222 = memref.load %arg1[%c1_162, %c18_163] : memref<3x25xf32, #tpu.memory_space<smem>>
    %c1_164 = arith.constant 1 : index
    %c19_165 = arith.constant 19 : index
    %223 = memref.load %arg1[%c1_164, %c19_165] : memref<3x25xf32, #tpu.memory_space<smem>>
    %c1_166 = arith.constant 1 : index
    %c20_167 = arith.constant 20 : index
    %224 = memref.load %arg1[%c1_166, %c20_167] : memref<3x25xf32, #tpu.memory_space<smem>>
    %c1_168 = arith.constant 1 : index
    %c21_169 = arith.constant 21 : index
    %225 = memref.load %arg1[%c1_168, %c21_169] : memref<3x25xf32, #tpu.memory_space<smem>>
    %c1_170 = arith.constant 1 : index
    %c22_171 = arith.constant 22 : index
    %226 = memref.load %arg1[%c1_170, %c22_171] : memref<3x25xf32, #tpu.memory_space<smem>>
    %c1_172 = arith.constant 1 : index
    %c23_173 = arith.constant 23 : index
    %227 = memref.load %arg1[%c1_172, %c23_173] : memref<3x25xf32, #tpu.memory_space<smem>>
    %c1_174 = arith.constant 1 : index
    %c24_175 = arith.constant 24 : index
    %228 = memref.load %arg1[%c1_174, %c24_175] : memref<3x25xf32, #tpu.memory_space<smem>>
    %c1_176 = arith.constant 1 : index
    %229 = memref.load %arg2[%c1_176] : memref<3xf32, #tpu.memory_space<smem>>
    %cst_177 = arith.constant 0.000000e+00 : f32
    %230 = vector.broadcast %cst_177 : f32 to vector<8x32xf32>
    %c6_178 = arith.constant 6 : index
    %c0_179 = arith.constant 0 : index
    %231 = vector.load %arg17[%c6_178, %c0_179] : memref<24x128xf32, #tpu.memory_space<vmem>>, vector<8x32xf32>
    %232 = vector.broadcast %204 : f32 to vector<8x32xf32>
    %233 = arith.mulf %232, %231 : vector<8x32xf32>
    %234 = arith.addf %230, %233 : vector<8x32xf32>
    %c6_180 = arith.constant 6 : index
    %c1_181 = arith.constant 1 : index
    %235 = vector.load %arg17[%c6_180, %c1_181] : memref<24x128xf32, #tpu.memory_space<vmem>>, vector<8x32xf32>
    %236 = vector.broadcast %205 : f32 to vector<8x32xf32>
    %237 = arith.mulf %236, %235 : vector<8x32xf32>
    %238 = arith.addf %234, %237 : vector<8x32xf32>
    %c6_182 = arith.constant 6 : index
    %c2_183 = arith.constant 2 : index
    %239 = vector.load %arg17[%c6_182, %c2_183] : memref<24x128xf32, #tpu.memory_space<vmem>>, vector<8x32xf32>
    %240 = vector.broadcast %206 : f32 to vector<8x32xf32>
    %241 = arith.mulf %240, %239 : vector<8x32xf32>
    %242 = arith.addf %238, %241 : vector<8x32xf32>
    %c6_184 = arith.constant 6 : index
    %c3_185 = arith.constant 3 : index
    %243 = vector.load %arg17[%c6_184, %c3_185] : memref<24x128xf32, #tpu.memory_space<vmem>>, vector<8x32xf32>
    %244 = vector.broadcast %207 : f32 to vector<8x32xf32>
    %245 = arith.mulf %244, %243 : vector<8x32xf32>
    %246 = arith.addf %242, %245 : vector<8x32xf32>
    %c6_186 = arith.constant 6 : index
    %c4_187 = arith.constant 4 : index
    %247 = vector.load %arg17[%c6_186, %c4_187] : memref<24x128xf32, #tpu.memory_space<vmem>>, vector<8x32xf32>
    %248 = vector.broadcast %208 : f32 to vector<8x32xf32>
    %249 = arith.mulf %248, %247 : vector<8x32xf32>
    %250 = arith.addf %246, %249 : vector<8x32xf32>
    %c7_188 = arith.constant 7 : index
    %c0_189 = arith.constant 0 : index
    %251 = vector.load %arg17[%c7_188, %c0_189] : memref<24x128xf32, #tpu.memory_space<vmem>>, vector<8x32xf32>
    %252 = vector.broadcast %209 : f32 to vector<8x32xf32>
    %253 = arith.mulf %252, %251 : vector<8x32xf32>
    %254 = arith.addf %250, %253 : vector<8x32xf32>
    %c7_190 = arith.constant 7 : index
    %c1_191 = arith.constant 1 : index
    %255 = vector.load %arg17[%c7_190, %c1_191] : memref<24x128xf32, #tpu.memory_space<vmem>>, vector<8x32xf32>
    %256 = vector.broadcast %210 : f32 to vector<8x32xf32>
    %257 = arith.mulf %256, %255 : vector<8x32xf32>
    %258 = arith.addf %254, %257 : vector<8x32xf32>
    %c7_192 = arith.constant 7 : index
    %c2_193 = arith.constant 2 : index
    %259 = vector.load %arg17[%c7_192, %c2_193] : memref<24x128xf32, #tpu.memory_space<vmem>>, vector<8x32xf32>
    %260 = vector.broadcast %211 : f32 to vector<8x32xf32>
    %261 = arith.mulf %260, %259 : vector<8x32xf32>
    %262 = arith.addf %258, %261 : vector<8x32xf32>
    %c7_194 = arith.constant 7 : index
    %c3_195 = arith.constant 3 : index
    %263 = vector.load %arg17[%c7_194, %c3_195] : memref<24x128xf32, #tpu.memory_space<vmem>>, vector<8x32xf32>
    %264 = vector.broadcast %212 : f32 to vector<8x32xf32>
    %265 = arith.mulf %264, %263 : vector<8x32xf32>
    %266 = arith.addf %262, %265 : vector<8x32xf32>
    %c7_196 = arith.constant 7 : index
    %c4_197 = arith.constant 4 : index
    %267 = vector.load %arg17[%c7_196, %c4_197] : memref<24x128xf32, #tpu.memory_space<vmem>>, vector<8x32xf32>
    %268 = vector.broadcast %213 : f32 to vector<8x32xf32>
    %269 = arith.mulf %268, %267 : vector<8x32xf32>
    %270 = arith.addf %266, %269 : vector<8x32xf32>
    %c8_198 = arith.constant 8 : index
    %c0_199 = arith.constant 0 : index
    %271 = vector.load %arg17[%c8_198, %c0_199] : memref<24x128xf32, #tpu.memory_space<vmem>>, vector<8x32xf32>
    %272 = vector.broadcast %214 : f32 to vector<8x32xf32>
    %273 = arith.mulf %272, %271 : vector<8x32xf32>
    %274 = arith.addf %270, %273 : vector<8x32xf32>
    %c8_200 = arith.constant 8 : index
    %c1_201 = arith.constant 1 : index
    %275 = vector.load %arg17[%c8_200, %c1_201] : memref<24x128xf32, #tpu.memory_space<vmem>>, vector<8x32xf32>
    %276 = vector.broadcast %215 : f32 to vector<8x32xf32>
    %277 = arith.mulf %276, %275 : vector<8x32xf32>
    %278 = arith.addf %274, %277 : vector<8x32xf32>
    %c8_202 = arith.constant 8 : index
    %c2_203 = arith.constant 2 : index
    %279 = vector.load %arg17[%c8_202, %c2_203] : memref<24x128xf32, #tpu.memory_space<vmem>>, vector<8x32xf32>
    %280 = vector.broadcast %216 : f32 to vector<8x32xf32>
    %281 = arith.mulf %280, %279 : vector<8x32xf32>
    %282 = arith.addf %278, %281 : vector<8x32xf32>
    %c8_204 = arith.constant 8 : index
    %c3_205 = arith.constant 3 : index
    %283 = vector.load %arg17[%c8_204, %c3_205] : memref<24x128xf32, #tpu.memory_space<vmem>>, vector<8x32xf32>
    %284 = vector.broadcast %217 : f32 to vector<8x32xf32>
    %285 = arith.mulf %284, %283 : vector<8x32xf32>
    %286 = arith.addf %282, %285 : vector<8x32xf32>
    %c8_206 = arith.constant 8 : index
    %c4_207 = arith.constant 4 : index
    %287 = vector.load %arg17[%c8_206, %c4_207] : memref<24x128xf32, #tpu.memory_space<vmem>>, vector<8x32xf32>
    %288 = vector.broadcast %218 : f32 to vector<8x32xf32>
    %289 = arith.mulf %288, %287 : vector<8x32xf32>
    %290 = arith.addf %286, %289 : vector<8x32xf32>
    %c9_208 = arith.constant 9 : index
    %c0_209 = arith.constant 0 : index
    %291 = vector.load %arg17[%c9_208, %c0_209] : memref<24x128xf32, #tpu.memory_space<vmem>>, vector<8x32xf32>
    %292 = vector.broadcast %219 : f32 to vector<8x32xf32>
    %293 = arith.mulf %292, %291 : vector<8x32xf32>
    %294 = arith.addf %290, %293 : vector<8x32xf32>
    %c9_210 = arith.constant 9 : index
    %c1_211 = arith.constant 1 : index
    %295 = vector.load %arg17[%c9_210, %c1_211] : memref<24x128xf32, #tpu.memory_space<vmem>>, vector<8x32xf32>
    %296 = vector.broadcast %220 : f32 to vector<8x32xf32>
    %297 = arith.mulf %296, %295 : vector<8x32xf32>
    %298 = arith.addf %294, %297 : vector<8x32xf32>
    %c9_212 = arith.constant 9 : index
    %c2_213 = arith.constant 2 : index
    %299 = vector.load %arg17[%c9_212, %c2_213] : memref<24x128xf32, #tpu.memory_space<vmem>>, vector<8x32xf32>
    %300 = vector.broadcast %221 : f32 to vector<8x32xf32>
    %301 = arith.mulf %300, %299 : vector<8x32xf32>
    %302 = arith.addf %298, %301 : vector<8x32xf32>
    %c9_214 = arith.constant 9 : index
    %c3_215 = arith.constant 3 : index
    %303 = vector.load %arg17[%c9_214, %c3_215] : memref<24x128xf32, #tpu.memory_space<vmem>>, vector<8x32xf32>
    %304 = vector.broadcast %222 : f32 to vector<8x32xf32>
    %305 = arith.mulf %304, %303 : vector<8x32xf32>
    %306 = arith.addf %302, %305 : vector<8x32xf32>
    %c9_216 = arith.constant 9 : index
    %c4_217 = arith.constant 4 : index
    %307 = vector.load %arg17[%c9_216, %c4_217] : memref<24x128xf32, #tpu.memory_space<vmem>>, vector<8x32xf32>
    %308 = vector.broadcast %223 : f32 to vector<8x32xf32>
    %309 = arith.mulf %308, %307 : vector<8x32xf32>
    %310 = arith.addf %306, %309 : vector<8x32xf32>
    %c10_218 = arith.constant 10 : index
    %c0_219 = arith.constant 0 : index
    %311 = vector.load %arg17[%c10_218, %c0_219] : memref<24x128xf32, #tpu.memory_space<vmem>>, vector<8x32xf32>
    %312 = vector.broadcast %224 : f32 to vector<8x32xf32>
    %313 = arith.mulf %312, %311 : vector<8x32xf32>
    %314 = arith.addf %310, %313 : vector<8x32xf32>
    %c10_220 = arith.constant 10 : index
    %c1_221 = arith.constant 1 : index
    %315 = vector.load %arg17[%c10_220, %c1_221] : memref<24x128xf32, #tpu.memory_space<vmem>>, vector<8x32xf32>
    %316 = vector.broadcast %225 : f32 to vector<8x32xf32>
    %317 = arith.mulf %316, %315 : vector<8x32xf32>
    %318 = arith.addf %314, %317 : vector<8x32xf32>
    %c10_222 = arith.constant 10 : index
    %c2_223 = arith.constant 2 : index
    %319 = vector.load %arg17[%c10_222, %c2_223] : memref<24x128xf32, #tpu.memory_space<vmem>>, vector<8x32xf32>
    %320 = vector.broadcast %226 : f32 to vector<8x32xf32>
    %321 = arith.mulf %320, %319 : vector<8x32xf32>
    %322 = arith.addf %318, %321 : vector<8x32xf32>
    %c10_224 = arith.constant 10 : index
    %c3_225 = arith.constant 3 : index
    %323 = vector.load %arg17[%c10_224, %c3_225] : memref<24x128xf32, #tpu.memory_space<vmem>>, vector<8x32xf32>
    %324 = vector.broadcast %227 : f32 to vector<8x32xf32>
    %325 = arith.mulf %324, %323 : vector<8x32xf32>
    %326 = arith.addf %322, %325 : vector<8x32xf32>
    %c10_226 = arith.constant 10 : index
    %c4_227 = arith.constant 4 : index
    %327 = vector.load %arg17[%c10_226, %c4_227] : memref<24x128xf32, #tpu.memory_space<vmem>>, vector<8x32xf32>
    %328 = vector.broadcast %228 : f32 to vector<8x32xf32>
    %329 = arith.mulf %328, %327 : vector<8x32xf32>
    %330 = arith.addf %326, %329 : vector<8x32xf32>
    %331 = vector.broadcast %229 : f32 to vector<8x32xf32>
    %332 = arith.addf %330, %331 : vector<8x32xf32>
    %cst_228 = arith.constant 0.000000e+00 : f32
    %333 = vector.broadcast %cst_228 : f32 to vector<8x32xf32>
    %334 = arith.maximumf %332, %333 : vector<8x32xf32>
    %c8_229 = arith.constant 8 : index
    %c2_230 = arith.constant 2 : index
    %335 = vector.load %arg17[%c8_229, %c2_230] : memref<24x128xf32, #tpu.memory_space<vmem>>, vector<8x32xf32>
    tpu.vector_store %arg17[%c8_229, %c2_230], %334 {strides = array<i32>} : memref<24x128xf32, #tpu.memory_space<vmem>>, vector<8x32xf32>,
    %c2_231 = arith.constant 2 : index
    %c0_232 = arith.constant 0 : index
    %336 = memref.load %arg1[%c2_231, %c0_232] : memref<3x25xf32, #tpu.memory_space<smem>>
    %c2_233 = arith.constant 2 : index
    %c1_234 = arith.constant 1 : index
    %337 = memref.load %arg1[%c2_233, %c1_234] : memref<3x25xf32, #tpu.memory_space<smem>>
    %c2_235 = arith.constant 2 : index
    %c2_236 = arith.constant 2 : index
    %338 = memref.load %arg1[%c2_235, %c2_236] : memref<3x25xf32, #tpu.memory_space<smem>>
    %c2_237 = arith.constant 2 : index
    %c3_238 = arith.constant 3 : index
    %339 = memref.load %arg1[%c2_237, %c3_238] : memref<3x25xf32, #tpu.memory_space<smem>>
    %c2_239 = arith.constant 2 : index
    %c4_240 = arith.constant 4 : index
    %340 = memref.load %arg1[%c2_239, %c4_240] : memref<3x25xf32, #tpu.memory_space<smem>>
    %c2_241 = arith.constant 2 : index
    %c5_242 = arith.constant 5 : index
    %341 = memref.load %arg1[%c2_241, %c5_242] : memref<3x25xf32, #tpu.memory_space<smem>>
    %c2_243 = arith.constant 2 : index
    %c6_244 = arith.constant 6 : index
    %342 = memref.load %arg1[%c2_243, %c6_244] : memref<3x25xf32, #tpu.memory_space<smem>>
    %c2_245 = arith.constant 2 : index
    %c7_246 = arith.constant 7 : index
    %343 = memref.load %arg1[%c2_245, %c7_246] : memref<3x25xf32, #tpu.memory_space<smem>>
    %c2_247 = arith.constant 2 : index
    %c8_248 = arith.constant 8 : index
    %344 = memref.load %arg1[%c2_247, %c8_248] : memref<3x25xf32, #tpu.memory_space<smem>>
    %c2_249 = arith.constant 2 : index
    %c9_250 = arith.constant 9 : index
    %345 = memref.load %arg1[%c2_249, %c9_250] : memref<3x25xf32, #tpu.memory_space<smem>>
    %c2_251 = arith.constant 2 : index
    %c10_252 = arith.constant 10 : index
    %346 = memref.load %arg1[%c2_251, %c10_252] : memref<3x25xf32, #tpu.memory_space<smem>>
    %c2_253 = arith.constant 2 : index
    %c11_254 = arith.constant 11 : index
    %347 = memref.load %arg1[%c2_253, %c11_254] : memref<3x25xf32, #tpu.memory_space<smem>>
    %c2_255 = arith.constant 2 : index
    %c12_256 = arith.constant 12 : index
    %348 = memref.load %arg1[%c2_255, %c12_256] : memref<3x25xf32, #tpu.memory_space<smem>>
    %c2_257 = arith.constant 2 : index
    %c13_258 = arith.constant 13 : index
    %349 = memref.load %arg1[%c2_257, %c13_258] : memref<3x25xf32, #tpu.memory_space<smem>>
    %c2_259 = arith.constant 2 : index
    %c14_260 = arith.constant 14 : index
    %350 = memref.load %arg1[%c2_259, %c14_260] : memref<3x25xf32, #tpu.memory_space<smem>>
    %c2_261 = arith.constant 2 : index
    %c15_262 = arith.constant 15 : index
    %351 = memref.load %arg1[%c2_261, %c15_262] : memref<3x25xf32, #tpu.memory_space<smem>>
    %c2_263 = arith.constant 2 : index
    %c16_264 = arith.constant 16 : index
    %352 = memref.load %arg1[%c2_263, %c16_264] : memref<3x25xf32, #tpu.memory_space<smem>>
    %c2_265 = arith.constant 2 : index
    %c17_266 = arith.constant 17 : index
    %353 = memref.load %arg1[%c2_265, %c17_266] : memref<3x25xf32, #tpu.memory_space<smem>>
    %c2_267 = arith.constant 2 : index
    %c18_268 = arith.constant 18 : index
    %354 = memref.load %arg1[%c2_267, %c18_268] : memref<3x25xf32, #tpu.memory_space<smem>>
    %c2_269 = arith.constant 2 : index
    %c19_270 = arith.constant 19 : index
    %355 = memref.load %arg1[%c2_269, %c19_270] : memref<3x25xf32, #tpu.memory_space<smem>>
    %c2_271 = arith.constant 2 : index
    %c20_272 = arith.constant 20 : index
    %356 = memref.load %arg1[%c2_271, %c20_272] : memref<3x25xf32, #tpu.memory_space<smem>>
    %c2_273 = arith.constant 2 : index
    %c21_274 = arith.constant 21 : index
    %357 = memref.load %arg1[%c2_273, %c21_274] : memref<3x25xf32, #tpu.memory_space<smem>>
    %c2_275 = arith.constant 2 : index
    %c22_276 = arith.constant 22 : index
    %358 = memref.load %arg1[%c2_275, %c22_276] : memref<3x25xf32, #tpu.memory_space<smem>>
    %c2_277 = arith.constant 2 : index
    %c23_278 = arith.constant 23 : index
    %359 = memref.load %arg1[%c2_277, %c23_278] : memref<3x25xf32, #tpu.memory_space<smem>>
    %c2_279 = arith.constant 2 : index
    %c24_280 = arith.constant 24 : index
    %360 = memref.load %arg1[%c2_279, %c24_280] : memref<3x25xf32, #tpu.memory_space<smem>>
    %c2_281 = arith.constant 2 : index
    %361 = memref.load %arg2[%c2_281] : memref<3xf32, #tpu.memory_space<smem>>
    %cst_282 = arith.constant 0.000000e+00 : f32
    %362 = vector.broadcast %cst_282 : f32 to vector<8x32xf32>
    %c6_283 = arith.constant 6 : index
    %c0_284 = arith.constant 0 : index
    %363 = vector.load %arg17[%c6_283, %c0_284] : memref<24x128xf32, #tpu.memory_space<vmem>>, vector<8x32xf32>
    %364 = vector.broadcast %336 : f32 to vector<8x32xf32>
    %365 = arith.mulf %364, %363 : vector<8x32xf32>
    %366 = arith.addf %362, %365 : vector<8x32xf32>
    %c6_285 = arith.constant 6 : index
    %c1_286 = arith.constant 1 : index
    %367 = vector.load %arg17[%c6_285, %c1_286] : memref<24x128xf32, #tpu.memory_space<vmem>>, vector<8x32xf32>
    %368 = vector.broadcast %337 : f32 to vector<8x32xf32>
    %369 = arith.mulf %368, %367 : vector<8x32xf32>
    %370 = arith.addf %366, %369 : vector<8x32xf32>
    %c6_287 = arith.constant 6 : index
    %c2_288 = arith.constant 2 : index
    %371 = vector.load %arg17[%c6_287, %c2_288] : memref<24x128xf32, #tpu.memory_space<vmem>>, vector<8x32xf32>
    %372 = vector.broadcast %338 : f32 to vector<8x32xf32>
    %373 = arith.mulf %372, %371 : vector<8x32xf32>
    %374 = arith.addf %370, %373 : vector<8x32xf32>
    %c6_289 = arith.constant 6 : index
    %c3_290 = arith.constant 3 : index
    %375 = vector.load %arg17[%c6_289, %c3_290] : memref<24x128xf32, #tpu.memory_space<vmem>>, vector<8x32xf32>
    %376 = vector.broadcast %339 : f32 to vector<8x32xf32>
    %377 = arith.mulf %376, %375 : vector<8x32xf32>
    %378 = arith.addf %374, %377 : vector<8x32xf32>
    %c6_291 = arith.constant 6 : index
    %c4_292 = arith.constant 4 : index
    %379 = vector.load %arg17[%c6_291, %c4_292] : memref<24x128xf32, #tpu.memory_space<vmem>>, vector<8x32xf32>
    %380 = vector.broadcast %340 : f32 to vector<8x32xf32>
    %381 = arith.mulf %380, %379 : vector<8x32xf32>
    %382 = arith.addf %378, %381 : vector<8x32xf32>
    %c7_293 = arith.constant 7 : index
    %c0_294 = arith.constant 0 : index
    %383 = vector.load %arg17[%c7_293, %c0_294] : memref<24x128xf32, #tpu.memory_space<vmem>>, vector<8x32xf32>
    %384 = vector.broadcast %341 : f32 to vector<8x32xf32>
    %385 = arith.mulf %384, %383 : vector<8x32xf32>
    %386 = arith.addf %382, %385 : vector<8x32xf32>
    %c7_295 = arith.constant 7 : index
    %c1_296 = arith.constant 1 : index
    %387 = vector.load %arg17[%c7_295, %c1_296] : memref<24x128xf32, #tpu.memory_space<vmem>>, vector<8x32xf32>
    %388 = vector.broadcast %342 : f32 to vector<8x32xf32>
    %389 = arith.mulf %388, %387 : vector<8x32xf32>
    %390 = arith.addf %386, %389 : vector<8x32xf32>
    %c7_297 = arith.constant 7 : index
    %c2_298 = arith.constant 2 : index
    %391 = vector.load %arg17[%c7_297, %c2_298] : memref<24x128xf32, #tpu.memory_space<vmem>>, vector<8x32xf32>
    %392 = vector.broadcast %343 : f32 to vector<8x32xf32>
    %393 = arith.mulf %392, %391 : vector<8x32xf32>
    %394 = arith.addf %390, %393 : vector<8x32xf32>
    %c7_299 = arith.constant 7 : index
    %c3_300 = arith.constant 3 : index
    %395 = vector.load %arg17[%c7_299, %c3_300] : memref<24x128xf32, #tpu.memory_space<vmem>>, vector<8x32xf32>
    %396 = vector.broadcast %344 : f32 to vector<8x32xf32>
    %397 = arith.mulf %396, %395 : vector<8x32xf32>
    %398 = arith.addf %394, %397 : vector<8x32xf32>
    %c7_301 = arith.constant 7 : index
    %c4_302 = arith.constant 4 : index
    %399 = vector.load %arg17[%c7_301, %c4_302] : memref<24x128xf32, #tpu.memory_space<vmem>>, vector<8x32xf32>
    %400 = vector.broadcast %345 : f32 to vector<8x32xf32>
    %401 = arith.mulf %400, %399 : vector<8x32xf32>
    %402 = arith.addf %398, %401 : vector<8x32xf32>
    %c8_303 = arith.constant 8 : index
    %c0_304 = arith.constant 0 : index
    %403 = vector.load %arg17[%c8_303, %c0_304] : memref<24x128xf32, #tpu.memory_space<vmem>>, vector<8x32xf32>
    %404 = vector.broadcast %346 : f32 to vector<8x32xf32>
    %405 = arith.mulf %404, %403 : vector<8x32xf32>
    %406 = arith.addf %402, %405 : vector<8x32xf32>
    %c8_305 = arith.constant 8 : index
    %c1_306 = arith.constant 1 : index
    %407 = vector.load %arg17[%c8_305, %c1_306] : memref<24x128xf32, #tpu.memory_space<vmem>>, vector<8x32xf32>
    %408 = vector.broadcast %347 : f32 to vector<8x32xf32>
    %409 = arith.mulf %408, %407 : vector<8x32xf32>
    %410 = arith.addf %406, %409 : vector<8x32xf32>
    %c8_307 = arith.constant 8 : index
    %c2_308 = arith.constant 2 : index
    %411 = vector.load %arg17[%c8_307, %c2_308] : memref<24x128xf32, #tpu.memory_space<vmem>>, vector<8x32xf32>
    %412 = vector.broadcast %348 : f32 to vector<8x32xf32>
    %413 = arith.mulf %412, %411 : vector<8x32xf32>
    %414 = arith.addf %410, %413 : vector<8x32xf32>
    %c8_309 = arith.constant 8 : index
    %c3_310 = arith.constant 3 : index
    %415 = vector.load %arg17[%c8_309, %c3_310] : memref<24x128xf32, #tpu.memory_space<vmem>>, vector<8x32xf32>
    %416 = vector.broadcast %349 : f32 to vector<8x32xf32>
    %417 = arith.mulf %416, %415 : vector<8x32xf32>
    %418 = arith.addf %414, %417 : vector<8x32xf32>
    %c8_311 = arith.constant 8 : index
    %c4_312 = arith.constant 4 : index
    %419 = vector.load %arg17[%c8_311, %c4_312] : memref<24x128xf32, #tpu.memory_space<vmem>>, vector<8x32xf32>
    %420 = vector.broadcast %350 : f32 to vector<8x32xf32>
    %421 = arith.mulf %420, %419 : vector<8x32xf32>
    %422 = arith.addf %418, %421 : vector<8x32xf32>
    %c9_313 = arith.constant 9 : index
    %c0_314 = arith.constant 0 : index
    %423 = vector.load %arg17[%c9_313, %c0_314] : memref<24x128xf32, #tpu.memory_space<vmem>>, vector<8x32xf32>
    %424 = vector.broadcast %351 : f32 to vector<8x32xf32>
    %425 = arith.mulf %424, %423 : vector<8x32xf32>
    %426 = arith.addf %422, %425 : vector<8x32xf32>
    %c9_315 = arith.constant 9 : index
    %c1_316 = arith.constant 1 : index
    %427 = vector.load %arg17[%c9_315, %c1_316] : memref<24x128xf32, #tpu.memory_space<vmem>>, vector<8x32xf32>
    %428 = vector.broadcast %352 : f32 to vector<8x32xf32>
    %429 = arith.mulf %428, %427 : vector<8x32xf32>
    %430 = arith.addf %426, %429 : vector<8x32xf32>
    %c9_317 = arith.constant 9 : index
    %c2_318 = arith.constant 2 : index
    %431 = vector.load %arg17[%c9_317, %c2_318] : memref<24x128xf32, #tpu.memory_space<vmem>>, vector<8x32xf32>
    %432 = vector.broadcast %353 : f32 to vector<8x32xf32>
    %433 = arith.mulf %432, %431 : vector<8x32xf32>
    %434 = arith.addf %430, %433 : vector<8x32xf32>
    %c9_319 = arith.constant 9 : index
    %c3_320 = arith.constant 3 : index
    %435 = vector.load %arg17[%c9_319, %c3_320] : memref<24x128xf32, #tpu.memory_space<vmem>>, vector<8x32xf32>
    %436 = vector.broadcast %354 : f32 to vector<8x32xf32>
    %437 = arith.mulf %436, %435 : vector<8x32xf32>
    %438 = arith.addf %434, %437 : vector<8x32xf32>
    %c9_321 = arith.constant 9 : index
    %c4_322 = arith.constant 4 : index
    %439 = vector.load %arg17[%c9_321, %c4_322] : memref<24x128xf32, #tpu.memory_space<vmem>>, vector<8x32xf32>
    %440 = vector.broadcast %355 : f32 to vector<8x32xf32>
    %441 = arith.mulf %440, %439 : vector<8x32xf32>
    %442 = arith.addf %438, %441 : vector<8x32xf32>
    %c10_323 = arith.constant 10 : index
    %c0_324 = arith.constant 0 : index
    %443 = vector.load %arg17[%c10_323, %c0_324] : memref<24x128xf32, #tpu.memory_space<vmem>>, vector<8x32xf32>
    %444 = vector.broadcast %356 : f32 to vector<8x32xf32>
    %445 = arith.mulf %444, %443 : vector<8x32xf32>
    %446 = arith.addf %442, %445 : vector<8x32xf32>
    %c10_325 = arith.constant 10 : index
    %c1_326 = arith.constant 1 : index
    %447 = vector.load %arg17[%c10_325, %c1_326] : memref<24x128xf32, #tpu.memory_space<vmem>>, vector<8x32xf32>
    %448 = vector.broadcast %357 : f32 to vector<8x32xf32>
    %449 = arith.mulf %448, %447 : vector<8x32xf32>
    %450 = arith.addf %446, %449 : vector<8x32xf32>
    %c10_327 = arith.constant 10 : index
    %c2_328 = arith.constant 2 : index
    %451 = vector.load %arg17[%c10_327, %c2_328] : memref<24x128xf32, #tpu.memory_space<vmem>>, vector<8x32xf32>
    %452 = vector.broadcast %358 : f32 to vector<8x32xf32>
    %453 = arith.mulf %452, %451 : vector<8x32xf32>
    %454 = arith.addf %450, %453 : vector<8x32xf32>
    %c10_329 = arith.constant 10 : index
    %c3_330 = arith.constant 3 : index
    %455 = vector.load %arg17[%c10_329, %c3_330] : memref<24x128xf32, #tpu.memory_space<vmem>>, vector<8x32xf32>
    %456 = vector.broadcast %359 : f32 to vector<8x32xf32>
    %457 = arith.mulf %456, %455 : vector<8x32xf32>
    %458 = arith.addf %454, %457 : vector<8x32xf32>
    %c10_331 = arith.constant 10 : index
    %c4_332 = arith.constant 4 : index
    %459 = vector.load %arg17[%c10_331, %c4_332] : memref<24x128xf32, #tpu.memory_space<vmem>>, vector<8x32xf32>
    %460 = vector.broadcast %360 : f32 to vector<8x32xf32>
    %461 = arith.mulf %460, %459 : vector<8x32xf32>
    %462 = arith.addf %458, %461 : vector<8x32xf32>
    %463 = vector.broadcast %361 : f32 to vector<8x32xf32>
    %464 = arith.addf %462, %463 : vector<8x32xf32>
    %cst_333 = arith.constant 0.000000e+00 : f32
    %465 = vector.broadcast %cst_333 : f32 to vector<8x32xf32>
    %466 = arith.maximumf %464, %465 : vector<8x32xf32>
    %c8_334 = arith.constant 8 : index
    %c2_335 = arith.constant 2 : index
    %467 = vector.load %arg17[%c8_334, %c2_335] : memref<24x128xf32, #tpu.memory_space<vmem>>, vector<8x32xf32>
    tpu.vector_store %arg17[%c8_334, %c2_335], %466 {strides = array<i32>} : memref<24x128xf32, #tpu.memory_space<vmem>>, vector<8x32xf32>,
    %c0_336 = arith.constant 0 : index
    %c0_337 = arith.constant 0 : index
    %468 = vector.load %arg8[%c0_336, %c0_337] : memref<1x128xf32, #tpu.memory_space<vmem>>, vector<1x128xf32>
    %c0_338 = arith.constant 0 : index
    %c0_339 = arith.constant 0 : index
    %469 = vector.load %arg6[%c0_338, %c0_339] : memref<32x128xf32, #tpu.memory_space<vmem>>, vector<32x128xf32>
    %cst_340 = arith.constant dense<0.000000e+00> : vector<1x128xf32>
    %470 = tpu.matmul %5, %469, %cst_340 {dimension_numbers = #tpu.dot_dimension_numbers<[1], [0], [0], [1], [0, 0, 1, 1], [], []>} : vector<1x32xf32>, vector<32x128xf32>, vector<1x128xf32> -> vector<1x128xf32>
    %471 = arith.addf %470, %468 : vector<1x128xf32>
    %cst_341 = arith.constant 0.000000e+00 : f32
    %472 = vector.broadcast %cst_341 : f32 to vector<1x128xf32>
    %473 = arith.maximumf %471, %472 : vector<1x128xf32>
    %c8_342 = arith.constant 8 : index
    %c0_343 = arith.constant 0 : index
    %474 = vector.load %arg17[%c8_342, %c0_343] : memref<24x128xf32, #tpu.memory_space<vmem>>, vector<8x128xf32>
    %c0_344 = arith.constant 0 : index
    %c0_345 = arith.constant 0 : index
    %475 = vector.load %arg7[%c0_344, %c0_345] : memref<128x128xf32, #tpu.memory_space<vmem>>, vector<128x128xf32>
    %cst_346 = arith.constant dense<0.000000e+00> : vector<8x128xf32>
    %476 = tpu.matmul %474, %475, %cst_346 {dimension_numbers = #tpu.dot_dimension_numbers<[1], [0], [0], [1], [0, 0, 1, 1], [], []>} : vector<8x128xf32>, vector<128x128xf32>, vector<8x128xf32> -> vector<8x128xf32>
    %477 = vector.broadcast %468 : vector<1x128xf32> to vector<8x128xf32>
    %478 = arith.addf %476, %477 : vector<8x128xf32>
    %cst_347 = arith.constant 0.000000e+00 : f32
    %479 = vector.broadcast %cst_347 : f32 to vector<8x128xf32>
    %480 = arith.maximumf %478, %479 : vector<8x128xf32>
    %481 = vector.broadcast %473 : vector<1x128xf32> to vector<8x128xf32>
    %482 = arith.mulf %480, %481 : vector<8x128xf32>
    %cst_348 = arith.constant dense<0.000000e+00> : vector<8xf32>
    %483 = vector.multi_reduction <add>, %482, %cst_348 [1] : vector<8x128xf32> to vector<8xf32>
    %484 = vector.shape_cast %483 : vector<8xf32> to vector<8x1xf32>
    %485 = math.tanh %484 : vector<8x1xf32>
    %486 = vector.broadcast %485 : vector<8x1xf32> to vector<8x128xf32>
    %487 = arith.mulf %486, %480 : vector<8x128xf32>
    %cst_349 = arith.constant dense<0.000000e+00> : vector<128xf32>
    %488 = vector.multi_reduction <add>, %487, %cst_349 [0] : vector<8x128xf32> to vector<128xf32>
    %489 = vector.shape_cast %488 : vector<128xf32> to vector<1x128xf32>
    %cst_350 = arith.constant 1.250000e-01 : f32
    %490 = vector.broadcast %cst_350 : f32 to vector<1x128xf32>
    %491 = arith.mulf %489, %490 : vector<1x128xf32>
    %c0_351 = arith.constant 0 : index
    %c0_352 = arith.constant 0 : index
    %492 = vector.load %arg9[%c0_351, %c0_352] : memref<32x128xf32, #tpu.memory_space<vmem>>, vector<32x128xf32>
    %cst_353 = arith.constant dense<0.000000e+00> : vector<1x128xf32>
    %493 = tpu.matmul %5, %492, %cst_353 {dimension_numbers = #tpu.dot_dimension_numbers<[1], [0], [0], [1], [0, 0, 1, 1], [], []>} : vector<1x32xf32>, vector<32x128xf32>, vector<1x128xf32> -> vector<1x128xf32>
    %c0_354 = arith.constant 0 : index
    %c0_355 = arith.constant 0 : index
    %494 = vector.load %arg10[%c0_354, %c0_355] : memref<128x128xf32, #tpu.memory_space<vmem>>, vector<128x128xf32>
    %cst_356 = arith.constant dense<0.000000e+00> : vector<1x128xf32>
    %495 = tpu.matmul %491, %494, %cst_356 {dimension_numbers = #tpu.dot_dimension_numbers<[1], [0], [0], [1], [0, 0, 1, 1], [], []>} : vector<1x128xf32>, vector<128x128xf32>, vector<1x128xf32> -> vector<1x128xf32>
    %496 = arith.addf %493, %495 : vector<1x128xf32>
    %c0_357 = arith.constant 0 : index
    %c0_358 = arith.constant 0 : index
    %497 = vector.load %arg11[%c0_357, %c0_358] : memref<1x128xf32, #tpu.memory_space<vmem>>, vector<1x128xf32>
    %498 = arith.addf %496, %497 : vector<1x128xf32>
    %cst_359 = arith.constant 0.000000e+00 : f32
    %499 = vector.broadcast %cst_359 : f32 to vector<1x128xf32>
    %500 = arith.maximumf %498, %499 : vector<1x128xf32>
    %c0_360 = arith.constant 0 : index
    %c0_361 = arith.constant 0 : index
    %c0_362 = arith.constant 0 : index
    %501 = vector.load %arg12[%c0_360, %c0_361, %c0_362] : memref<2x128x128xf32, #tpu.memory_space<vmem>>, vector<1x128x128xf32>
    %502 = vector.shape_cast %501 : vector<1x128x128xf32> to vector<128x128xf32>
    %cst_363 = arith.constant dense<0.000000e+00> : vector<1x128xf32>
    %503 = tpu.matmul %500, %502, %cst_363 {dimension_numbers = #tpu.dot_dimension_numbers<[1], [0], [0], [1], [0, 0, 1, 1], [], []>} : vector<1x128xf32>, vector<128x128xf32>, vector<1x128xf32> -> vector<1x128xf32>
    %c0_364 = arith.constant 0 : index
    %c0_365 = arith.constant 0 : index
    %c0_366 = arith.constant 0 : index
    %504 = vector.load %arg13[%c0_364, %c0_365, %c0_366] : memref<2x1x128xf32, #tpu.memory_space<vmem>>, vector<1x1x128xf32>
    %505 = vector.shape_cast %504 : vector<1x1x128xf32> to vector<1x128xf32>
    %506 = arith.addf %503, %505 : vector<1x128xf32>
    %cst_367 = arith.constant 0.000000e+00 : f32
    %507 = vector.broadcast %cst_367 : f32 to vector<1x128xf32>
    %508 = arith.maximumf %506, %507 : vector<1x128xf32>
    %c1_368 = arith.constant 1 : index
    %c0_369 = arith.constant 0 : index
    %c0_370 = arith.constant 0 : index
    %509 = vector.load %arg12[%c1_368, %c0_369, %c0_370] : memref<2x128x128xf32, #tpu.memory_space<vmem>>, vector<1x128x128xf32>
    %510 = vector.shape_cast %509 : vector<1x128x128xf32> to vector<128x128xf32>
    %cst_371 = arith.constant dense<0.000000e+00> : vector<1x128xf32>
    %511 = tpu.matmul %508, %510, %cst_371 {dimension_numbers = #tpu.dot_dimension_numbers<[1], [0], [0], [1], [0, 0, 1, 1], [], []>} : vector<1x128xf32>, vector<128x128xf32>, vector<1x128xf32> -> vector<1x128xf32>
    %c1_372 = arith.constant 1 : index
    %c0_373 = arith.constant 0 : index
    %c0_374 = arith.constant 0 : index
    %512 = vector.load %arg13[%c1_372, %c0_373, %c0_374] : memref<2x1x128xf32, #tpu.memory_space<vmem>>, vector<1x1x128xf32>
    %513 = vector.shape_cast %512 : vector<1x1x128xf32> to vector<1x128xf32>
    %514 = arith.addf %511, %513 : vector<1x128xf32>
    %cst_375 = arith.constant 0.000000e+00 : f32
    %515 = vector.broadcast %cst_375 : f32 to vector<1x128xf32>
    %516 = arith.maximumf %514, %515 : vector<1x128xf32>
    %c0_376 = arith.constant 0 : index
    %c0_377 = arith.constant 0 : index
    %517 = vector.load %arg14[%c0_376, %c0_377] : memref<128x128xf32, #tpu.memory_space<vmem>>, vector<128x128xf32>
    %cst_378 = arith.constant dense<0.000000e+00> : vector<1x128xf32>
    %518 = tpu.matmul %516, %517, %cst_378 {dimension_numbers = #tpu.dot_dimension_numbers<[1], [0], [0], [1], [0, 0, 1, 1], [], []>} : vector<1x128xf32>, vector<128x128xf32>, vector<1x128xf32> -> vector<1x128xf32>
    %c0_379 = arith.constant 0 : index
    %c0_380 = arith.constant 0 : index
    %519 = vector.load %arg15[%c0_379, %c0_380] : memref<1x128xf32, #tpu.memory_space<vmem>>, vector<1x128xf32>
    %520 = arith.addf %518, %519 : vector<1x128xf32>
    %521 = vector.shape_cast %520 : vector<1x128xf32> to vector<1x128xf32>
    %522 = vector.broadcast %521 : vector<1x128xf32> to vector<8x128xf32>
    %c0_381 = arith.constant 0 : index
    %c0_382 = arith.constant 0 : index
    %c0_383 = arith.constant 0 : index
    %523 = vector.load %arg16[%c0_381, %c0_382, %c0_383] : memref<1x8x128xf32, #tpu.memory_space<vmem>>, vector<1x8x128xf32>
    %524 = vector.shape_cast %523 : vector<1x8x128xf32> to vector<8x128xf32>
    %525 = vector.shape_cast %522 : vector<8x128xf32> to vector<1x8x128xf32>
    tpu.vector_store %arg16[%c0_381, %c0_382, %c0_383], %525 {strides = array<i32>} : memref<1x8x128xf32, #tpu.memory_space<vmem>>, vector<1x8x128xf32>,
    return
  }
  func.func @transform_0(%arg0: i32) -> (i32, i32) {
    %c0_i32 = arith.constant 0 : i32
    %c0_i32_0 = arith.constant 0 : i32
    %c0_i32_1 = arith.constant 0 : i32
    return %c0_i32, %c0_i32_0 : i32, i32
  }
  func.func @transform_1(%arg0: i32) -> i32 {
    %c0_i32 = arith.constant 0 : i32
    %c0_i32_0 = arith.constant 0 : i32
    return %c0_i32 : i32
  }
  func.func @transform_2(%arg0: i32) -> (i32, i32) {
    %c0_i32 = arith.constant 0 : i32
    %c0_i32_0 = arith.constant 0 : i32
    %c0_i32_1 = arith.constant 0 : i32
    return %c0_i32, %c0_i32_0 : i32, i32
  }
  func.func @transform_3(%arg0: i32) -> (i32, i32, i32) {
    %c0_i32 = arith.constant 0 : i32
    %c0_i32_0 = arith.constant 0 : i32
    %c0_i32_1 = arith.constant 0 : i32
    return %arg0, %c0_i32, %c0_i32_0 : i32, i32, i32
  }
  func.func @transform_4(%arg0: i32) -> (i32, i32) {
    %c0_i32 = arith.constant 0 : i32
    %c0_i32_0 = arith.constant 0 : i32
    %c0_i32_1 = arith.constant 0 : i32
    return %c0_i32, %c0_i32_0 : i32, i32
  }
  func.func @transform_5(%arg0: i32) -> (i32, i32) {
    %c0_i32 = arith.constant 0 : i32
    %c0_i32_0 = arith.constant 0 : i32
    %c0_i32_1 = arith.constant 0 : i32
    return %c0_i32, %c0_i32_0 : i32, i32
  }
  func.func @transform_6(%arg0: i32) -> (i32, i32) {
    %c0_i32 = arith.constant 0 : i32
    %c0_i32_0 = arith.constant 0 : i32
    %c0_i32_1 = arith.constant 0 : i32
    return %c0_i32, %c0_i32_0 : i32, i32
  }
  func.func @transform_7(%arg0: i32) -> (i32, i32) {
    %c0_i32 = arith.constant 0 : i32
    %c0_i32_0 = arith.constant 0 : i32
    %c0_i32_1 = arith.constant 0 : i32
    return %c0_i32, %c0_i32_0 : i32, i32
  }
  func.func @transform_8(%arg0: i32) -> (i32, i32) {
    %c0_i32 = arith.constant 0 : i32
    %c0_i32_0 = arith.constant 0 : i32
    %c0_i32_1 = arith.constant 0 : i32
    return %c0_i32, %c0_i32_0 : i32, i32
  }
  func.func @transform_9(%arg0: i32) -> (i32, i32) {
    %c0_i32 = arith.constant 0 : i32
    %c0_i32_0 = arith.constant 0 : i32
    %c0_i32_1 = arith.constant 0 : i32
    return %c0_i32, %c0_i32_0 : i32, i32
  }
  func.func @transform_10(%arg0: i32) -> (i32, i32) {
    %c0_i32 = arith.constant 0 : i32
    %c0_i32_0 = arith.constant 0 : i32
    %c0_i32_1 = arith.constant 0 : i32
    return %c0_i32, %c0_i32_0 : i32, i32
  }
  func.func @transform_11(%arg0: i32) -> (i32, i32, i32) {
    %c0_i32 = arith.constant 0 : i32
    %c0_i32_0 = arith.constant 0 : i32
    %c0_i32_1 = arith.constant 0 : i32
    %c0_i32_2 = arith.constant 0 : i32
    return %c0_i32, %c0_i32_0, %c0_i32_1 : i32, i32, i32
  }
  func.func @transform_12(%arg0: i32) -> (i32, i32, i32) {
    %c0_i32 = arith.constant 0 : i32
    %c0_i32_0 = arith.constant 0 : i32
    %c0_i32_1 = arith.constant 0 : i32
    %c0_i32_2 = arith.constant 0 : i32
    return %c0_i32, %c0_i32_0, %c0_i32_1 : i32, i32, i32
  }
  func.func @transform_13(%arg0: i32) -> (i32, i32) {
    %c0_i32 = arith.constant 0 : i32
    %c0_i32_0 = arith.constant 0 : i32
    %c0_i32_1 = arith.constant 0 : i32
    return %c0_i32, %c0_i32_0 : i32, i32
  }
  func.func @transform_14(%arg0: i32) -> (i32, i32) {
    %c0_i32 = arith.constant 0 : i32
    %c0_i32_0 = arith.constant 0 : i32
    %c0_i32_1 = arith.constant 0 : i32
    return %c0_i32, %c0_i32_0 : i32, i32
  }
  func.func @transform_15(%arg0: i32) -> (i32, i32, i32) {
    %c0_i32 = arith.constant 0 : i32
    %c0_i32_0 = arith.constant 0 : i32
    %c0_i32_1 = arith.constant 0 : i32
    return %arg0, %c0_i32, %c0_i32_0 : i32, i32, i32
  }
}

</mosaic_0001>

<bundles_post_ra>
// kernel: forward.1
= control target key start
LH: loop header
LB: loop body
LE: loop exit
PB: predicated region body
PF: predicated region fallthrough
CT: control target
= control target key end

     0   :  { %s3350_s0 = inlined_call_operand.vmem [shape: f32[3,25], index: 0, kind: input, shape index: {}]   ;;  %s3351_s1 = inlined_call_operand.vmem [shape: f32[3], index: 1, kind: input, shape index: {}]   ;;  %s3352_s2 = inlined_call_operand.vmem [shape: s32[4,8], index: 2, kind: input, shape index: {}]   ;;  %s3353_s3 = inlined_call_operand.vmem [shape: f32[4,10,32], index: 3, kind: input, shape index: {}]   ;;  %s3354_s4 = inlined_call_operand.hbm [shape: f32[160,128], index: 4, kind: input, shape index: {}]   ;;  %s3355_s5 = inlined_call_operand.vmem [shape: f32[32,128], index: 5, kind: input, shape index: {}]   ;;  %s3356_s6 = inlined_call_operand.hbm [shape: f32[128,128], index: 6, kind: input, shape index: {}]   ;;  %s3357_s7 = inlined_call_operand.vmem [shape: f32[1,128], index: 7, kind: input, shape index: {}]   ;;  %s3358_s8 = inlined_call_operand.vmem [shape: f32[32,128], index: 8, kind: input, shape index: {}]   ;;  %s3359_s9 = inlined_call_operand.hbm [shape: f32[128,128], index: 9, kind: input, shape index: {}]   ;;  %s3360_s10 = inlined_call_operand.vmem [shape: f32[1,128], index: 10, kind: input, shape index: {}]   ;;  %s3361_s11 = inlined_call_operand.hbm [shape: f32[2,128,128], index: 11, kind: input, shape index: {}]   ;;  %s3362_s12 = inlined_call_operand.vmem [shape: f32[2,1,128], index: 12, kind: input, shape index: {}]   ;;  %s3363_s13 = inlined_call_operand.hbm [shape: f32[128,128], index: 13, kind: input, shape index: {}]   ;;  %s3364_s14 = inlined_call_operand.vmem [shape: f32[1,128], index: 14, kind: input, shape index: {}]   ;;  %s3365_s15 = inlined_call_operand.vmem [shape: f32[4,8,128], index: 15, kind: output, shape index: {}]  }
   0x1   :  { %3368 = sst [smem:[#allocation21_spill]] %s3350_s0 }
   0x2   :  { %3369 = sst [smem:[#allocation22_spill]] %s3351_s1 }
   0x3   :  { %3370 = sst [smem:[#allocation23_spill]] %s3352_s2 }
   0x4   :  { %3371 = sst [smem:[#allocation24_spill]] %s3354_s4 }
   0x5   :  { %3372 = sst [smem:[#allocation25_spill]] %s3356_s6 }
   0x6   :  { %3373 = sst [smem:[#allocation26_spill]] %s3359_s9 }
   0x7   :  { %3374 = sst [smem:[#allocation27_spill]] %s3361_s11 }
   0x8   :  { %20 = vsyncpa [#allocation5], 0 }
   0x9   :  { %21 = vsyncpa [#allocation7], 0 }
   0xa   :  { %22 = vsyncpa [#allocation4], 0 }
   0xb   :  { %23 = vsyncpa [#allocation11], 0 }
   0xc   :  { %24 = vsyncpa [#allocation14], 0  ;;  %s2833_s18 = smov 0  }
   0xd LB: > { %s3375_s1 = sld [smem:[#allocation22_spill]]  ;;  %s2842_s22 = sadd.s32 4294967295, %s2734_s18   ;;  %s2734_s18 = sphi %s2833_s18, %s30_s18  }
   0xe   : > { %p2027_p0 = scmp.ge.s32.totalorder %s2734_s18, 1  ;;  %p381_p1 = scmp.lt.s32.totalorder %s2734_s18, 5 }
   0xf   : > { %p3366_p2 = scmp.eq.s32.totalorder %s2842_s22, 0  ;;  %s2736_s24 = smov [#allocation10]  }
  0x10   : > { %p2847_p3 = pnand %p2027_p0, %p381_p1  ;;  %s442_s25 = sshll.u32 %s2736_s24, 4  ;;  %s2853_s25 = int_to_ptr.vmem [resolvable:$true] %s442_s25 }
  0x11   : > { %s2737_s27 = smov [#allocation13]   ;;  %s3378_s0 = sld [smem:[#allocation21_spill]] }
  0x12   : > { %s3376_s23 = scalar_select %p2847_p3, 1, 0 }
  0x13   : > { %s405_s21 = sshll.u32 %s3375_s1, 4  ;;  %p2464_p4 = pneg %p2847_p3  ;;  %s406_s21 = int_to_ptr.vmem [resolvable:$true] %s405_s21 }
  0x14   : > { %s477_s28 = sshll.u32 %s2737_s27, 4  ;;  %s2533_s17 = scalar_lea.vmem %s406_s21, 16  ;;  %s2861_s28 = int_to_ptr.vmem [resolvable:$true] %s477_s28 }
  0x15   : > { %p2857_p5 = pnand %p3366_p2, %p2464_p4  ;;  %p2534_p6 = scmp.ne.s32.totalorder %s406_s21, %s2533_s17 }
  0x16   : > { %p2541_p10 = scmp.lt.s32.totalorder %s406_s21, %s406_s21  ;;  %p2542_p11 = scmp.lt.s32.totalorder %s2533_s17, %s2533_s17 }
  0x17   : > { %s394_s16 = sshll.u32 %s3378_s0, 4  ;;  %p2870_p7 = pneg %p2857_p5  ;;  %s2866_s16 = int_to_ptr.vmem [resolvable:$true] %s394_s16 }
  0x18   : > { %p2543_p12 = por %p2542_p11, %p2541_p10 }
  0x19   : > { %p2536_p8 = pnand %p2870_p7, %p2534_p6 }
  0x1b   : > { %p2537_p9 = pneg %p2536_p8 }
  0x1d   : > { %p2544_p13 = pnand %p2543_p12, %p2537_p9 }
  0x1f   : > { %2547 = shalt.err (!%p2544_p13)
}
  0x20   : > { %s2738_s20 = smov [#allocation6]   ;;  %s2559_s24 = scalar_lea.vmem %s2853_s25, 2048 }
  0x21   : > { %2470 = dma.vmem_to_smem (!%p2857_p5), %s406_s21, 16, %s2738_s20, [#allocation7]  }
  0x22   : > { %p2560_p0 = scmp.ne.s32.totalorder %s2853_s25, %s2559_s24  ;;  %p2567_p6 = scmp.lt.s32.totalorder %s2853_s25, %s2853_s25 }
  0x23   : > { %p2568_p8 = scmp.lt.s32.totalorder %s2559_s24, %s2559_s24 }
  0x24   : > { %p2562_p1 = pnand %p2560_p0, %p2870_p7 }
  0x25   : > { %p2569_p2 = por %p2568_p8, %p2567_p6 }
  0x26   : > { %p2563_p4 = pneg %p2562_p1 }
  0x28   : > { %p2570_p10 = pnand %p2569_p2, %p2563_p4 }
  0x2a   : > { %2573 = shalt.err (!%p2570_p10)
}
  0x2b   : > { %s2739_s27 = smov 128   ;;  %s2740_s29 = smov 8  }
  0x2c   : > { %s3380_s6 = sld [smem:[#allocation25_spill]]  ;;  %s2585_s17 = scalar_lea.vmem %s2861_s28, 4096 }
  0x2d   : > { %p2586_p9 = scmp.ne.s32.totalorder %s2861_s28, %s2585_s17  ;;  %p2593_p12 = scmp.lt.s32.totalorder %s2861_s28, %s2861_s28 }
  0x2e   : > { %p2594_p13 = scmp.lt.s32.totalorder %s2585_s17, %s2585_s17 }
  0x2f   : > { %p2588_p2 = pnand %p2586_p9, %p2870_p7 }
  0x30   : > { %p2595_p0 = por %p2594_p13, %p2593_p12 }
  0x31   : > { %p2589_p11 = pneg %p2588_p2 }
  0x32   : > { %2479 = dma.hbm_to_vmem [thread:$0]  (!%p2857_p5), %s3380_s6, 2048, %s2853_s25, [#allocation11], %s2739_s27, %s2739_s27, %s2740_s29  }
  0x33   : > { %p2596_p1 = pnand %p2595_p0, %p2589_p11 }
  0x35   : > { %2599 = shalt.err (!%p2596_p1)
}
  0x36   : > { %s3381_s11 = sld [smem:[#allocation27_spill]]  ;;  %s2600_s17 = scalar_lea.vmem %s2866_s16, 64 }
  0x37   : > { %s3382_s2 = sld [smem:[#allocation23_spill]]  ;;  %p2601_p4 = scmp.ne.s32.totalorder %s2866_s16, %s2600_s17 }
  0x38   : > { %p2608_p10 = scmp.lt.s32.totalorder %s2866_s16, %s2866_s16  ;;  %p2609_p9 = scmp.lt.s32.totalorder %s2600_s17, %s2600_s17 }
  0x39   : > { %p2603_p6 = pnand %p2601_p4, %p2870_p7 }
  0x3a   : > { %p2610_p2 = por %p2609_p9, %p2608_p10 }
  0x3b   : > { %p2604_p8 = pneg %p2603_p6 }
  0x3c   : > { %2485 = dma.hbm_to_vmem [thread:$0]  (!%p2857_p5), %s3381_s11, 4096, %s2861_s28, [#allocation14], %s2739_s27, %s2739_s27, %s2740_s29  }
  0x3d   : > { %s416_s30 = sshll.u32 %s3382_s2, 4  ;;  %p2611_p11 = pnand %p2610_p2, %p2604_p8  ;;  %s417_s30 = int_to_ptr.vmem [resolvable:$true] %s416_s30 }
  0x3f   : > { %2614 = shalt.err (!%p2611_p11)
}
  0x40   : > { %s2741_s20 = smov [#allocation3]   ;;  %s2615_s28 = scalar_lea.vmem %s417_s30, 64 }
  0x41   : > { %2467 = dma.vmem_to_smem (!%p2857_p5), %s2866_s16, 64, %s2741_s20, [#allocation5]  }
  0x42   : > { %p2616_p12 = scmp.ne.s32.totalorder %s417_s30, %s2615_s28  ;;  %p2623_p1 = scmp.lt.s32.totalorder %s417_s30, %s417_s30 }
  0x43   : > { %p2624_p4 = scmp.lt.s32.totalorder %s2615_s28, %s2615_s28 }
  0x44   : > { %p2618_p13 = pnand %p2616_p12, %p2870_p7 }
  0x45   : > { %p2625_p6 = por %p2624_p4, %p2623_p1 }
  0x46   : > { %p2619_p0 = pneg %p2618_p13 }
  0x48   : > { %p2626_p3 = pnand %p2625_p6, %p2619_p0 }
  0x4a   : > { %2629 = shalt.err (!%p2626_p3)
}
  0x4b   : > { %s2742_s24 = smov [#allocation8]   ;;  %s2743_s25 = smov [#allocation9]  }
  0x4c   : > { %2473 = dma.vmem_to_smem (!%p2857_p5), %s417_s30, 64, %s2742_s24, [#allocation7]  }
  0x4d   : > { %s426_s21 = sshll.u32 %s2743_s25, 4  ;;  %s2744_s17 = smov [#allocation12]   ;;  %s427_s21 = int_to_ptr.vmem [resolvable:$true] %s426_s21 }
  0x4e   : > { %s461_s16 = sshll.u32 %s2744_s17, 4  ;;  %s2641_s20 = scalar_lea.vmem %s427_s21, 2560  ;;  %s462_s16 = int_to_ptr.vmem [resolvable:$true] %s461_s16 }
  0x4f   : > { %p2642_p8 = scmp.ne.s32.totalorder %s427_s21, %s2641_s20  ;;  %p2649_p2 = scmp.lt.s32.totalorder %s427_s21, %s427_s21 }
  0x50   : > { %p2650_p11 = scmp.lt.s32.totalorder %s2641_s20, %s2641_s20 }
  0x51   : > { %p2644_p10 = pnand %p2642_p8, %p2870_p7 }
  0x52   : > { %p2651_p12 = por %p2650_p11, %p2649_p2 }
  0x53   : > { %p2645_p9 = pneg %p2644_p10 }
  0x55   : > { %p2652_p3 = pnand %p2651_p12, %p2645_p9 }
  0x57   : > { %2655 = shalt.err (!%p2652_p3)
}
  0x58   : > { %s3383_s4 = sld [smem:[#allocation24_spill]]  ;;  %s2667_s24 = scalar_lea.vmem %s462_s16, 2048 }
  0x59   : > { %p2668_p13 = scmp.ne.s32.totalorder %s462_s16, %s2667_s24  ;;  %p2675_p4 = scmp.lt.s32.totalorder %s462_s16, %s462_s16 }
  0x5a   : > { %p2676_p6 = scmp.lt.s32.totalorder %s2667_s24, %s2667_s24 }
  0x5b   : > { %p2670_p0 = pnand %p2668_p13, %p2870_p7 }
  0x5c   : > { %p2677_p8 = por %p2676_p6, %p2675_p4 }
  0x5d   : > { %p2671_p1 = pneg %p2670_p0 }
  0x5e   : > { %2476 = dma.hbm_to_vmem [thread:$0]  (!%p2857_p5), %s3383_s4, 2560, %s427_s21, [#allocation4], %s2739_s27, %s2739_s27, %s2740_s29  }
  0x5f   : > { %p2678_p10 = pnand %p2677_p8, %p2671_p1 }
  0x61   : > { %2681 = shalt.err (!%p2678_p10)
}
  0x62   : > { %s3384_s9 = sld [smem:[#allocation26_spill]]  ;;  %s2745_s21 = smov [#allocation15]  }
  0x63   : > { %s493_s20 = sshll.u32 %s2745_s21, 4  ;;  %s494_s20 = int_to_ptr.vmem [resolvable:$true] %s493_s20 }
  0x64   : > { %s2693_s30 = scalar_lea.vmem %s494_s20, 2048  ;;  %p2701_p12 = scmp.lt.s32.totalorder %s494_s20, %s494_s20 }
  0x65   : > { %p2694_p9 = scmp.ne.s32.totalorder %s494_s20, %s2693_s30  ;;  %p2702_p3 = scmp.lt.s32.totalorder %s2693_s30, %s2693_s30 }
  0x67   : > { %p2696_p2 = pnand %p2694_p9, %p2870_p7  ;;  %p2703_p13 = por %p2702_p3, %p2701_p12 }
  0x68   : > { %2482 = dma.hbm_to_vmem [thread:$0]  (!%p2857_p5), %s3384_s9, 2048, %s462_s16, [#allocation11], %s2739_s27, %s2739_s27, %s2740_s29  }
  0x69   : > { %p2697_p11 = pneg %p2696_p2 }
  0x6b   : > { %p2704_p0 = pnand %p2703_p13, %p2697_p11 }
  0x6d   : > { %2707 = shalt.err (!%p2704_p0)
}
  0x6e   : > { %2488 = dma.hbm_to_vmem [thread:$0]  (!%p2857_p5), %s3363_s13, 2048, %s494_s20, [#allocation14], %s2739_s27, %s2739_s27, %s2740_s29  }
  0x6f   : > { %p3385_p1 = scmp.ne.s32.totalorder %s3376_s23, 0 }
  0x70   : > { %p3386_p7 = scmp.eq.s32.totalorder (!%p3385_p1), %s2842_s22, 0 }
  0x71   : > { %520 = sbr.rel (%p3385_p1) target bundleno = 2193 (0x891), region = 80 }
  0x76   : > { %2713 = dma.done.wait (%p3386_p7), [#allocation5], 64   ;;  %p3387_p4 = pmov %p3386_p7 }
  0x78   : > { %2715 = vsyncadd (%p3387_p4), [#allocation5], 4294967232  ;;  %p3388_p6 = pmov %p3387_p4 }
  0x79   : > { %p3389_p8 = pmov %p3387_p4 }
  0x7a   : > { %2717 = dma.done.wait (%p3388_p6), [#allocation7], 80  }
  0x7b   : > { %2719 = vsyncadd (%p3389_p8), [#allocation7], 4294967216  ;;  %p3390_p10 = pmov %p3387_p4 }
  0x7c   : > { %p3391_p5 = pmov %p3387_p4 }
  0x7d   : > { %2721 = dma.done.wait (%p3390_p10), [#allocation4], 2560  }
  0x7e   : > { %2723 = vsyncadd (%p3391_p5), [#allocation4], 4294964736  ;;  %p3392_p9 = pmov %p3387_p4 }
  0x7f   : > { %p3393_p2 = pmov %p3387_p4 }
  0x80   : > { %2725 = dma.done.wait (%p3392_p9), [#allocation11], 4096  }
  0x81   : > { %2727 = vsyncadd (%p3393_p2), [#allocation11], 4294963200  ;;  %p3394_p11 = pmov %p3393_p2 }
  0x82   : > { %p3395_p12 = pmov %p3393_p2 }
  0x83   : > { %2729 = dma.done.wait (%p3394_p11), [#allocation14], 6144  }
  0x84   : > { %2731 = vsyncadd (%p3395_p12), [#allocation14], 4294961152 }
  0x85   : > { %554 = sfence }
  0x86   : > { %s2977_s23 = sshll.u32 %s2842_s22, 7  ;;  %s2979_s26 = sld [smem:[#allocation3 + $0x1]]  ;;  %v2746_v0 = vmov 0.0   ;;  %vm863_vm0 = vcmask 277520   ;;  %vm2752_vm1 = vmmov 0   ;;  %vm607_vm2 = vcmask 261120  }
  0x87   : > { %619 = vst [vmem:[#allocation2] sm:$0xff] %v2746_v0  ;;  %620 = vst [vmem:[#allocation2 + $0x8] sm:$0xff] %v2746_v0  ;;  %s623_s19 = sld [smem:[#allocation8 + %s2977_s23]]  ;;  %s628_s27 = sadd.s32 1, %s2977_s23  ;;  %2235 = vmatprep.subr.mxu1 %v2746_v0  ;;  %2281 = vmatprep.subr.mxu0 %v2746_v0  ;;  %vm609_vm3 = vcmask 254976  }
  0x88   : > { %621 = vst [vmem:[#allocation2 + $0x10] sm:$0xff] %v2746_v0  ;;  %s629_s29 = sld [smem:[#allocation8 + %s628_s27]]  ;;  %s634_s24 = sadd.s32 2, %s2977_s23  ;;  %2243 = vmatprep.mubr.msk.f32.mxu1 %vm2752_vm1, %v2746_v0  ;;  %2313 = vmatprep.mubr.msk.f32.mxu0 %vm2752_vm1, %v2746_v0 }
  0x89   : > { %s635_s25 = sld [smem:[#allocation8 + %s634_s24]]  ;;  %s640_s17 = sadd.s32 3, %s2977_s23 }
  0x8a   : > { %s641_s21 = sld [smem:[#allocation8 + %s640_s17]]  ;;  %s646_s20 = sadd.s32 4, %s2977_s23 }
  0x8b   : > { %s647_s30 = sld [smem:[#allocation8 + %s646_s20]]  ;;  %s652_s28 = sadd.s32 5, %s2977_s23 }
  0x8c   : > { %s653_s16 = sld [smem:[#allocation8 + %s652_s28]]  ;;  %v700_v7 = vstv %s2979_s26  ;;  %p596_p3 = scmp.lt.s32.totalorder %s2842_s22, 3 }
  0x8d   : > { %s2050_s0 = sshll.u32 %s623_s19, 3  ;;  %s2992_s1 = sld [smem:[#allocation3 + $0x3]] }
  0x8e   : > { %s2051_s2 = sshll.u32 %s629_s29, 3  ;;  %s625_s4 = scalar_lea.vmem [#allocation9], %s2050_s0 }
  0x8f   : > { %v626_v1 = vld [vmem:[%s625_s4] sm:$0xff]  ;;  %s2052_s6 = sshll.u32 %s635_s25, 3  ;;  %s631_s9 = scalar_lea.vmem [#allocation9], %s2051_s2 }
  0x90   : > { %627 = vst [vmem:[#allocation2 + $0x8] sm:$0x1] %v626_v1  ;;  %v632_v2 = vld [vmem:[%s631_s9] sm:$0xff]  ;;  %s2053_s11 = sshll.u32 %s641_s21, 3  ;;  %s637_s27 = scalar_lea.vmem [#allocation9], %s2052_s6 }
  0x91   : > { %633 = vst [vmem:[#allocation2 + $0x9] sm:$0x1] %v632_v2  ;;  %v638_v3 = vld [vmem:[%s637_s27] sm:$0xff]  ;;  %s2054_s24 = sshll.u32 %s647_s30, 3  ;;  %s643_s17 = scalar_lea.vmem [#allocation9], %s2053_s11 }
  0x92   : > { %639 = vst [vmem:[#allocation2 + $0xa] sm:$0x1] %v638_v3  ;;  %v644_v4 = vld [vmem:[%s643_s17] sm:$0xff]  ;;  %s2055_s19 = sshll.u32 %s653_s16, 3  ;;  %s649_s0 = scalar_lea.vmem [#allocation9], %s2054_s24 }
  0x93   : > { %645 = vst [vmem:[#allocation2 + $0xb] sm:$0x1] %v644_v4  ;;  %v650_v5 = vld [vmem:[%s649_s0] sm:$0xff]  ;;  %s655_s4 = scalar_lea.vmem [#allocation9], %s2055_s19  ;;  %s2059_s2 = sld [smem:[#allocation3 + $0x2]]  ;;  %v714_v8 = vstv %s2992_s1 }
  0x94   : > { %651 = vst [vmem:[#allocation2 + $0xc] sm:$0x1] %v650_v5  ;;  %v656_v6 = vld [vmem:[%s655_s4] sm:$0xff]  ;;  %s2061_s9 = sld [smem:[#allocation3 + $0x4]]  ;;  %s658_s6 = sadd.s32 6, %s2977_s23 }
  0x95   : > { %657 = vst [vmem:[#allocation2 + $0xd] sm:$0x1] %v656_v6  ;;  %s659_s29 = sld [smem:[#allocation8 + %s658_s6]]  ;;  %s664_s25 = sadd.s32 7, %s2977_s23 }
  0x96   : > { %s665_s21 = sld [smem:[#allocation8 + %s664_s25]]  ;;  %s2747_s16 = smov 127  }
  0x97   : > { %s3000_s11 = sld [smem:[#allocation3 + $0x6]]  ;;  %s2748_s23 = smov 125  }
  0x98   : > { %s2064_s30 = sld [smem:[#allocation3 + $0x7]]  ;;  %s2749_s17 = smov 126  }
  0x99   : > { %v707_v10 = vstv %s2059_s2  ;;  %s3004_s28 = sld [smem:[#allocation3 + $0x8]]  ;;  %s2750_s19 = smov 124  }
  0x9a   : > { %v721_v11 = vstv %s2061_s9  ;;  %s2066_s26 = sld [smem:[#allocation3 + $0x9]]  ;;  %s3397_s22 = smov (!%p596_p3, %s2842_s22), 3 }
  0x9b   : > { %s2056_s20 = sshll.u32 %s659_s29, 3  ;;  %s2068_s24 = sld [smem:[#allocation3 + $0xb]] }
  0x9c   : > { %v2998_v9 = vld [vmem:[#allocation2 + $0x6] sm:$0xff]  ;;  %s661_s1 = scalar_lea.vmem [#allocation9], %s2056_s20  ;;  %s2057_s27 = sshll.u32 %s665_s21, 3 }
  0x9d   : > { %v701_v12 = vmul.f32 %v700_v7, %v2998_v9  ;;  %v715_v13 = vmul.f32 %v714_v8, %v2998_v9  ;;  %v708_v14 = vmul.f32 %v707_v10, %v2998_v9  ;;  %v722_v15 = vmul.f32 %v721_v11, %v2998_v9  ;;  %v662_v16 = vld [vmem:[%s661_s1] sm:$0xff]  ;;  %s667_s0 = scalar_lea.vmem [#allocation9], %s2057_s27  ;;  %s2069_s4 = sld [smem:[#allocation3 + $0xc]] }
  0x9e   : > { %663 = vst [vmem:[#allocation2 + $0xe] sm:$0x1] %v662_v16  ;;  %v668_v17 = vld [vmem:[%s667_s0] sm:$0xff]  ;;  %v732_v18 = vstv %s3000_s11  ;;  %v739_v19 = vstv %s2064_s30  ;;  %s2070_s2 = sld [smem:[#allocation3 + $0xd]] }
  0x9f   : > { %703 = vrot.lane.b32.xlu0 %v701_v12, %s2747_s16  ;;  %717 = vrot.lane.b32.xlu1 %v715_v13, %s2748_s23  ;;  %669 = vst [vmem:[#allocation2 + $0xf] sm:$0x1] %v668_v17  ;;  %v746_v21 = vstv %s3004_s28  ;;  %s2071_s9 = sld [smem:[#allocation3 + $0xe]] }
  0xa0   : > { %v753_v22 = vstv %s2066_s26  ;;  %s2073_s6 = sld [smem:[#allocation3 + $0x10]] }
  0xa1   : > { %v764_v28 = vstv %s2068_s24  ;;  %s2074_s29 = sld [smem:[#allocation3 + $0x11]] }
  0xa2   : > { %s2075_s25 = sld [smem:[#allocation3 + $0x12]] }
  0xa3   : > { %710 = vrot.lane.b32.xlu0 %v708_v14, %s2749_s17  ;;  %724 = vrot.lane.b32.xlu1 %v722_v15, %s2750_s19  ;;  %v771_v29 = vstv %s2069_s4  ;;  %s2076_s21 = sld [smem:[#allocation3 + $0x13]] }
  0xa4   : > { %v778_v32 = vstv %s2070_s2  ;;  %s2078_s11 = sld [smem:[#allocation3 + $0x15]]  ;;  %s2751_s2 = smov 2  }
  0xa5   : > { %v3013_v20 = vld [vmem:[#allocation2 + $0x7] sm:$0xff]  ;;  %v785_v33 = vstv %s2071_s9  ;;  %s2079_s20 = sld [smem:[#allocation3 + $0x16]] }
  0xa6   : > { %v733_v23 = vmul.f32 %v732_v18, %v3013_v20  ;;  %v740_v24 = vmul.f32 %v739_v19, %v3013_v20  ;;  %v747_v25 = vmul.f32 %v746_v21, %v3013_v20  ;;  %v754_v26 = vmul.f32 %v753_v22, %v3013_v20  ;;  %v3022_v27 = vld [vmem:[#allocation2 + $0x8] sm:$0xff]  ;;  %s2080_s30 = sld [smem:[#allocation3 + $0x17]] }
  0xa7   : > { %v765_v30 = vmul.f32 %v764_v28, %v3022_v27  ;;  %v772_v31 = vmul.f32 %v771_v29, %v3022_v27  ;;  %v779_v34 = vmul.f32 %v778_v32, %v3022_v27  ;;  %v786_v35 = vmul.f32 %v785_v33, %v3022_v27  ;;  %v3032_v36 = vld [vmem:[#allocation2 + $0x9] sm:$0xff]  ;;  %s2081_s28 = sld [smem:[#allocation3 + $0x18]] }
  0xa8   : > { %735 = vrot.lane.b32.xlu0 %v733_v23, %s2747_s16  ;;  %742 = vrot.lane.b32.xlu1 %v740_v24, %s2749_s17  ;;  %v796_v37 = vstv %s2073_s6  ;;  %v803_v38 = vstv %s2074_s29  ;;  %v3042_v45 = vld [vmem:[#allocation2 + $0xa] sm:$0xff]  ;;  %s670_s1 = sld [smem:[#allocation3]] }
  0xa9   : > { %v797_v39 = vmul.f32 %v796_v37, %v3032_v36  ;;  %v804_v40 = vmul.f32 %v803_v38, %v3032_v36  ;;  %v810_v41 = vstv %s2075_s25  ;;  %v817_v42 = vstv %s2076_s21  ;;  %s2062_s26 = sld [smem:[#allocation3 + $0x5]] }
  0xaa   : > { %v811_v43 = vmul.f32 %v810_v41, %v3032_v36  ;;  %v818_v44 = vmul.f32 %v817_v42, %v3032_v36  ;;  %v828_v46 = vstv %s2078_s11  ;;  %s2067_s27 = sld [smem:[#allocation3 + $0xa]] }
  0xab   : > { %v835_v47 = vstv %s2079_s20  ;;  %v829_v48 = vmul.f32 %v828_v46, %v3042_v45  ;;  %s2072_s24 = sld [smem:[#allocation3 + $0xf]] }
  0xac   : > { %749 = vrot.lane.b32.xlu0 %v747_v25, %s2748_s23  ;;  %756 = vrot.lane.b32.xlu1 %v754_v26, %s2750_s19  ;;  %v836_v49 = vmul.f32 %v835_v47, %v3042_v45  ;;  %v842_v50 = vstv %s2080_s30  ;;  %s2077_s0 = sld [smem:[#allocation3 + $0x14]] }
  0xad   : > { %v849_v51 = vstv %s2081_s28  ;;  %v843_v52 = vmul.f32 %v842_v50, %v3042_v45  ;;  %s695_s4 = sld [smem:[#allocation6]] }
  0xae   : > { %v850_v53 = vmul.f32 %v849_v51, %v3042_v45  ;;  %v697_v54 = vstv %s670_s1  ;;  %s2084_s9 = sld [smem:[#allocation3 + $0x82]] }
  0xaf   : > { %v698_v55 = vmul.f32 %v697_v54, %v2998_v9  ;;  %v729_v60 = vstv %s2062_s26  ;;  %s2083_s6 = sld [smem:[#allocation3 + $0x81]] }
  0xb0   : > { %767 = vrot.lane.b32.xlu0 %v765_v30, %s2747_s16  ;;  %774 = vrot.lane.b32.xlu1 %v772_v31, %s2749_s17  ;;  %v730_v1 = vmul.f32 %v729_v60, %v3013_v20  ;;  %v761_v7 = vstv %s2067_s27  ;;  %s2086_s29 = sld [smem:[#allocation3 + $0x84]] }
  0xb1   : > { %v762_v12 = vmul.f32 %v761_v7, %v3022_v27  ;;  %v793_v19 = vstv %s2072_s24  ;;  %s2085_s25 = sld [smem:[#allocation3 + $0x83]] }
  0xb2   : > { %v794_v23 = vmul.f32 %v793_v19, %v3032_v36  ;;  %v825_v27 = vstv %s2077_s0  ;;  %s2089_s21 = sld [smem:[#allocation3 + $0x87]] }
  0xb3   : > { %s2088_s11 = sld [smem:[#allocation3 + $0x86]] }
  0xb4   : > { %781 = vrot.lane.b32.xlu0 %v779_v34, %s2748_s23  ;;  %788 = vrot.lane.b32.xlu1 %v786_v35, %s2750_s19  ;;  %v826_v34 = vmul.f32 %v825_v27, %v3042_v45  ;;  %s2091_s20 = sld [smem:[#allocation3 + $0x89]] }
  0xb5   : > { %v895_v50 = vstv %s2083_s6  ;;  %s2090_s30 = sld [smem:[#allocation3 + $0x88]] }
  0xb6   : > { %v916_v54 = vstv %s2086_s29  ;;  %s2094_s28 = sld [smem:[#allocation3 + $0x8c]] }
  0xb7   : > { %s2093_s1 = sld [smem:[#allocation3 + $0x8b]] }
  0xb8   : > { %799 = vrot.lane.b32.xlu0 %v797_v39, %s2747_s16  ;;  %806 = vrot.lane.b32.xlu1 %v804_v40, %s2749_s17  ;;  %s2096_s26 = sld [smem:[#allocation3 + $0x8e]] }
  0xb9   : > { %v927_v60 = vstv %s2088_s11  ;;  %s2095_s27 = sld [smem:[#allocation3 + $0x8d]] }
  0xba   : > { %s2099_s24 = sld [smem:[#allocation3 + $0x91]] }
  0xbb   : > { %s2098_s0 = sld [smem:[#allocation3 + $0x90]] }
  0xbc   : > { %813 = vrot.lane.b32.xlu0 %v811_v43, %s2748_s23  ;;  %820 = vrot.lane.b32.xlu1 %v818_v44, %s2750_s19  ;;  %v856_v44 = vstv %s695_s4  ;;  %s2101_s4 = sld [smem:[#allocation3 + $0x93]] }
  0xbd   : > { %s2104_s6 = sld [smem:[#allocation3 + $0x96]] }
  0xbe   : > { %s2103_s29 = sld [smem:[#allocation3 + $0x95]] }
  0xbf   : > { %s2082_s11 = sld [smem:[#allocation3 + $0x80]] }
  0xc0   : > { %831 = vrot.lane.b32.xlu0 %v829_v48, %s2747_s16  ;;  %838 = vrot.lane.b32.xlu1 %v836_v49, %s2749_s17  ;;  %v902_v49 = vstv %s2084_s9  ;;  %s2100_s9 = sld [smem:[#allocation3 + $0x92]] }
  0xc4   : > { %845 = vrot.lane.b32.xlu0 %v843_v52, %s2748_s23  ;;  %852 = vrot.lane.b32.xlu1 %v850_v53, %s2750_s19 }
  0xc6   : > { %v1005_v19 = vstv %s2100_s9  ;;  %s2115_s9 = sld [smem:[#allocation3 + $0x107]] }
 0x111   : > { %v704_v56 = vpop.permute.xlu0 %703  ;;  %v718_v57 = vpop.permute.xlu1 %717 }
 0x112   : > { %v706_v58 = vadd.f32 %v704_v56, %v698_v55  ;;  %v909_v55 = vstv %s2085_s25  ;;  %s2106_s25 = sld [smem:[#allocation3 + $0x98]] }
 0x115   : > { %v711_v59 = vpop.permute.xlu0 %710  ;;  %v725_v62 = vpop.permute.xlu1 %724 }
 0x116   : > { %v713_v61 = vadd.f32 %v711_v59, %v706_v58  ;;  %v934_v59 = vstv %s2089_s21  ;;  %s2105_s21 = sld [smem:[#allocation3 + $0x97]] }
 0x118   : > { %v720_v63 = vadd.f32 %v718_v57, %v713_v61 }
 0x11a   : > { %v727_v2 = vadd.f32 %v725_v62, %v720_v63  ;;  %v736_v3 = vpop.permute.xlu0 %735  ;;  %v743_v5 = vpop.permute.xlu1 %742  ;;  %v948_v63 = vstv %s2091_s20  ;;  %s2087_s20 = sld [smem:[#allocation3 + $0x85]] }
 0x11c   : > { %v731_v4 = vadd.f32 %v730_v1, %v727_v2  ;;  %v941_v1 = vstv %s2090_s30  ;;  %s2092_s30 = sld [smem:[#allocation3 + $0x8a]] }
 0x11e   : > { %v738_v6 = vadd.f32 %v736_v3, %v731_v4  ;;  %v750_v10 = vpop.permute.xlu0 %749  ;;  %v757_v9 = vpop.permute.xlu1 %756 }
 0x120   : > { %v745_v8 = vadd.f32 %v743_v5, %v738_v6  ;;  %v966_v5 = vstv %s2094_s28  ;;  %v959_v6 = vstv %s2093_s1  ;;  %s2097_s28 = sld [smem:[#allocation3 + $0x8f]] }
 0x121   : > { %s2102_s1 = sld [smem:[#allocation3 + $0x94]] }
 0x122   : > { %v752_v11 = vadd.f32 %v750_v10, %v745_v8  ;;  %v768_v14 = vpop.permute.xlu0 %767  ;;  %v775_v15 = vpop.permute.xlu1 %774  ;;  %v980_v10 = vstv %s2096_s26  ;;  %s2107_s26 = sld [smem:[#allocation6 + $0x1]] }
 0x124   : > { %v759_v13 = vadd.f32 %v757_v9, %v752_v11  ;;  %v973_v9 = vstv %s2095_s27  ;;  %s2110_s27 = sld [smem:[#allocation3 + $0x102]] }
 0x126   : > { %v763_v16 = vadd.f32 %v762_v12, %v759_v13  ;;  %v782_v18 = vpop.permute.xlu0 %781  ;;  %v789_v21 = vpop.permute.xlu1 %788 }
 0x128   : > { %v770_v17 = vadd.f32 %v768_v14, %v763_v16  ;;  %v998_v14 = vstv %s2099_s24  ;;  %s2109_s24 = sld [smem:[#allocation3 + $0x101]] }
 0x12a   : > { %v777_v20 = vadd.f32 %v775_v15, %v770_v17  ;;  %v800_v24 = vpop.permute.xlu0 %799  ;;  %v807_v26 = vpop.permute.xlu1 %806  ;;  %v991_v15 = vstv %s2098_s0  ;;  %s2112_s0 = sld [smem:[#allocation3 + $0x104]] }
 0x12c   : > { %v784_v22 = vadd.f32 %v782_v18, %v777_v20  ;;  %v1012_v18 = vstv %s2101_s4  ;;  %s2111_s4 = sld [smem:[#allocation3 + $0x103]] }
 0x12e   : > { %v791_v25 = vadd.f32 %v789_v21, %v784_v22  ;;  %v814_v30 = vpop.permute.xlu0 %813  ;;  %v821_v32 = vpop.permute.xlu1 %820 }
 0x130   : > { %v795_v28 = vadd.f32 %v794_v23, %v791_v25  ;;  %v1030_v23 = vstv %s2104_s6  ;;  %s2114_s6 = sld [smem:[#allocation3 + $0x106]] }
 0x132   : > { %v802_v29 = vadd.f32 %v800_v24, %v795_v28  ;;  %v832_v35 = vpop.permute.xlu0 %831  ;;  %v839_v38 = vpop.permute.xlu1 %838  ;;  %v1023_v24 = vstv %s2103_s29  ;;  %v1044_v28 = vstv %s2106_s25  ;;  %s2117_s29 = sld [smem:[#allocation3 + $0x109]] }
 0x133   : > { %s2116_s25 = sld [smem:[#allocation3 + $0x108]] }
 0x134   : > { %v809_v31 = vadd.f32 %v807_v26, %v802_v29  ;;  %v1037_v29 = vstv %s2105_s21  ;;  %s2120_s21 = sld [smem:[#allocation3 + $0x10c]] }
 0x136   : > { %v816_v33 = vadd.f32 %v814_v30, %v809_v31  ;;  %v846_v41 = vpop.permute.xlu0 %845  ;;  %v853_v42 = vpop.permute.xlu1 %852  ;;  %v892_v31 = vstv %s2082_s11  ;;  %s2119_s11 = sld [smem:[#allocation3 + $0x10b]] }
 0x138   : > { %v823_v37 = vadd.f32 %v821_v32, %v816_v33 }
 0x13a   : > { %v827_v39 = vadd.f32 %v826_v34, %v823_v37 }
 0x13c   : > { %v834_v40 = vadd.f32 %v832_v35, %v827_v39 }
 0x13e   : > { %v841_v36 = vadd.f32 %v839_v38, %v834_v40  ;;  %v924_v40 = vstv %s2087_s20  ;;  %s2122_s20 = sld [smem:[#allocation3 + $0x10e]] }
 0x140   : > { %v848_v43 = vadd.f32 %v846_v41, %v841_v36 }
 0x142   : > { %v855_v46 = vadd.f32 %v853_v42, %v848_v43 }
 0x144   : > { %v857_v47 = vadd.f32 %v856_v44, %v855_v46 }
 0x146   : > { %v858_v48 = vmax.f32 %v857_v47, 0.0 }
 0x148   : > { %860 = vrot.lane.b32.xlu0 %v858_v48, %s2751_s2 }
 0x1ba   : > { %v861_v45 = vpop.permute.xlu0 %860 }
 0x1bb   : > { %864 = vst.msk [vmem:[#allocation2 + $0x8] sm:$0xff] %vm863_vm0, %v861_v45 }
 0x1c2   : > { %v3061_v51 = vld [vmem:[#allocation2 + $0x6] sm:$0xff] }
 0x1c3   : > { %v903_v52 = vmul.f32 %v902_v49, %v3061_v51  ;;  %v896_v53 = vmul.f32 %v895_v50, %v3061_v51  ;;  %v917_v56 = vmul.f32 %v916_v54, %v3061_v51  ;;  %v910_v57 = vmul.f32 %v909_v55, %v3061_v51  ;;  %v3069_v58 = vld [vmem:[#allocation2 + $0x7] sm:$0xff] }
 0x1c4   : > { %v935_v61 = vmul.f32 %v934_v59, %v3069_v58  ;;  %v928_v62 = vmul.f32 %v927_v60, %v3069_v58  ;;  %v949_v2 = vmul.f32 %v948_v63, %v3069_v58  ;;  %v942_v3 = vmul.f32 %v941_v1, %v3069_v58  ;;  %v3079_v4 = vld [vmem:[#allocation2 + $0x8] sm:$0xff] }
 0x1c5   : > { %905 = vrot.lane.b32.xlu0 %v903_v52, %s2749_s17  ;;  %898 = vrot.lane.b32.xlu1 %v896_v53, %s2747_s16  ;;  %v967_v7 = vmul.f32 %v966_v5, %v3079_v4  ;;  %v960_v8 = vmul.f32 %v959_v6, %v3079_v4  ;;  %v981_v11 = vmul.f32 %v980_v10, %v3079_v4  ;;  %v3089_v13 = vld [vmem:[#allocation2 + $0x9] sm:$0xff]  ;;  %v956_v50 = vstv %s2092_s30  ;;  %s2121_s30 = sld [smem:[#allocation3 + $0x10d]] }
 0x1c6   : > { %v974_v12 = vmul.f32 %v973_v9, %v3079_v4  ;;  %v999_v16 = vmul.f32 %v998_v14, %v3089_v13  ;;  %v992_v17 = vmul.f32 %v991_v15, %v3089_v13  ;;  %v1013_v20 = vmul.f32 %v1012_v18, %v3089_v13  ;;  %v3099_v22 = vld [vmem:[#allocation2 + $0xa] sm:$0xff] }
 0x1c7   : > { %v1006_v21 = vmul.f32 %v1005_v19, %v3089_v13  ;;  %v1031_v25 = vmul.f32 %v1030_v23, %v3099_v22  ;;  %v1024_v26 = vmul.f32 %v1023_v24, %v3099_v22  ;;  %v1045_v30 = vmul.f32 %v1044_v28, %v3099_v22 }
 0x1c8   : > { %v1038_v27 = vmul.f32 %v1037_v29, %v3099_v22  ;;  %v893_v32 = vmul.f32 %v892_v31, %v3061_v51  ;;  %v925_v42 = vmul.f32 %v924_v40, %v3069_v58  ;;  %v957_v55 = vmul.f32 %v956_v50, %v3079_v4 }
 0x1c9   : > { %919 = vrot.lane.b32.xlu0 %v917_v56, %s2750_s19  ;;  %912 = vrot.lane.b32.xlu1 %v910_v57, %s2748_s23  ;;  %v1020_v9 = vstv %s2102_s1  ;;  %v1089_v28 = vstv %s2109_s24  ;;  %s2124_s1 = sld [smem:[#allocation3 + $0x110]] }
 0x1ca   : > { %v1110_v31 = vstv %s2112_s0  ;;  %s2130_s24 = sld [smem:[#allocation3 + $0x116]] }
 0x1cb   : > { %v1167_v50 = vstv %s2121_s30  ;;  %s2129_s0 = sld [smem:[#allocation3 + $0x115]] }
 0x1cd   : > { %937 = vrot.lane.b32.xlu0 %v935_v61, %s2749_s17  ;;  %930 = vrot.lane.b32.xlu1 %v928_v62, %s2747_s16  ;;  %v988_v61 = vstv %s2097_s28  ;;  %s2125_s28 = sld [smem:[#allocation3 + $0x111]] }
 0x1d1   : > { %951 = vrot.lane.b32.xlu0 %v949_v2, %s2750_s19  ;;  %944 = vrot.lane.b32.xlu1 %v942_v3, %s2748_s23  ;;  %v989_v2 = vmul.f32 %v988_v61, %v3089_v13 }
 0x1d5   : > { %969 = vrot.lane.b32.xlu0 %v967_v7, %s2749_s17  ;;  %962 = vrot.lane.b32.xlu1 %v960_v8, %s2747_s16 }
 0x1d9   : > { %983 = vrot.lane.b32.xlu0 %v981_v11, %s2750_s19  ;;  %976 = vrot.lane.b32.xlu1 %v974_v12, %s2748_s23  ;;  %v1021_v12 = vmul.f32 %v1020_v9, %v3099_v22  ;;  %v1096_v22 = vstv %s2110_s27  ;;  %s2126_s27 = sld [smem:[#allocation3 + $0x112]]  ;;  %v1256_v9 = vld [vmem:[%s3355_s5 + $0x10] sm:$0xff] }
 0x1dd   : > { %1001 = vrot.lane.b32.xlu0 %v999_v16, %s2749_s17  ;;  %994 = vrot.lane.b32.xlu1 %v992_v17, %s2747_s16 }
 0x1e1   : > { %1015 = vrot.lane.b32.xlu0 %v1013_v20, %s2750_s19  ;;  %1008 = vrot.lane.b32.xlu1 %v1006_v21, %s2748_s23  ;;  %v1051_v21 = vstv %s2107_s26  ;;  %s2127_s26 = sld [smem:[#allocation3 + $0x113]] }
 0x1e5   : > { %1033 = vrot.lane.b32.xlu0 %v1031_v25, %s2749_s17  ;;  %1026 = vrot.lane.b32.xlu1 %v1024_v26, %s2747_s16 }
 0x1e9   : > { %1047 = vrot.lane.b32.xlu0 %v1045_v30, %s2750_s19  ;;  %1040 = vrot.lane.b32.xlu1 %v1038_v27, %s2748_s23 }
 0x237   : > { %v906_v33 = vpop.permute.xlu0 %905  ;;  %v899_v34 = vpop.permute.xlu1 %898 }
 0x238   : > { %v901_v35 = vadd.f32 %v899_v34, %v893_v32  ;;  %v1103_v32 = vstv %s2111_s4  ;;  %s2132_s4 = sld [smem:[#allocation3 + $0x118]] }
 0x23a   : > { %v908_v37 = vadd.f32 %v906_v33, %v901_v35 }
 0x23b   : > { %v920_v38 = vpop.permute.xlu0 %919  ;;  %v913_v39 = vpop.permute.xlu1 %912 }
 0x23c   : > { %v915_v41 = vadd.f32 %v913_v39, %v908_v37  ;;  %v1128_v37 = vstv %s2115_s9  ;;  %s2131_s9 = sld [smem:[#allocation3 + $0x117]] }
 0x23e   : > { %v922_v36 = vadd.f32 %v920_v38, %v915_v41  ;;  %v1121_v38 = vstv %s2114_s6  ;;  %v1142_v41 = vstv %s2117_s29 }
 0x23f   : > { %v938_v43 = vpop.permute.xlu0 %937  ;;  %v931_v44 = vpop.permute.xlu1 %930 }
 0x240   : > { %v926_v46 = vadd.f32 %v925_v42, %v922_v36  ;;  %v1135_v36 = vstv %s2116_s25 }
 0x242   : > { %v933_v47 = vadd.f32 %v931_v44, %v926_v46  ;;  %v1160_v46 = vstv %s2120_s21 }
 0x243   : > { %v952_v48 = vpop.permute.xlu0 %951  ;;  %v945_v45 = vpop.permute.xlu1 %944 }
 0x244   : > { %v940_v49 = vadd.f32 %v938_v43, %v933_v47  ;;  %v1153_v47 = vstv %s2119_s11  ;;  %s2139_s11 = sshll.u32 %s3397_s22, 4 }
 0x246   : > { %v947_v51 = vadd.f32 %v945_v45, %v940_v49  ;;  %v1174_v49 = vstv %s2122_s20 }
 0x247   : > { %v970_v52 = vpop.permute.xlu0 %969  ;;  %v963_v53 = vpop.permute.xlu1 %962 }
 0x248   : > { %v954_v54 = vadd.f32 %v952_v48, %v947_v51 }
 0x24a   : > { %v958_v56 = vadd.f32 %v957_v55, %v954_v54  ;;  %v1192_v54 = vstv %s2125_s28  ;;  %v1185_v55 = vstv %s2124_s1  ;;  %s600_s28 = scalar_lea.vmem %s3353_s3, %s2139_s11  ;;  %s2108_s1 = sld [smem:[#allocation3 + $0x100]] }
 0x24b   : > { %v977_v57 = vpop.permute.xlu1 %976  ;;  %v984_v60 = vpop.permute.xlu0 %983 }
 0x24c   : > { %v965_v59 = vadd.f32 %v963_v53, %v958_v56 }
 0x24e   : > { %v972_v58 = vadd.f32 %v970_v52, %v965_v59  ;;  %v1206_v59 = vstv %s2127_s26  ;;  %s2113_s26 = sld [smem:[#allocation3 + $0x105]] }
 0x24f   : > { %v995_v63 = vpop.permute.xlu1 %994  ;;  %v1002_v3 = vpop.permute.xlu0 %1001 }
 0x250   : > { %v979_v62 = vadd.f32 %v977_v57, %v972_v58 }
 0x252   : > { %v986_v1 = vadd.f32 %v984_v60, %v979_v62  ;;  %v1199_v60 = vstv %s2126_s27  ;;  %s2118_s27 = sld [smem:[#allocation3 + $0x10a]] }
 0x253   : > { %v1009_v7 = vpop.permute.xlu1 %1008  ;;  %v1016_v10 = vpop.permute.xlu0 %1015 }
 0x254   : > { %v990_v5 = vadd.f32 %v989_v2, %v986_v1  ;;  %v1217_v1 = vstv %s2129_s0  ;;  %s2128_s0 = sld [smem:[#allocation3 + $0x114]] }
 0x256   : > { %v997_v6 = vadd.f32 %v995_v63, %v990_v5  ;;  %v1224_v63 = vstv %s2130_s24  ;;  %v1238_v5 = vstv %s2132_s4  ;;  %s2123_s24 = sld [smem:[#allocation3 + $0x10f]] }
 0x257   : > { %v1027_v14 = vpop.permute.xlu1 %1026  ;;  %v1034_v16 = vpop.permute.xlu0 %1033  ;;  %s2133_s4 = sld [smem:[#allocation6 + $0x2]] }
 0x258   : > { %v1004_v8 = vadd.f32 %v1002_v3, %v997_v6  ;;  %v1231_v6 = vstv %s2131_s9 }
 0x25a   : > { %v1011_v4 = vadd.f32 %v1009_v7, %v1004_v8 }
 0x25b   : > { %v1041_v19 = vpop.permute.xlu1 %1040  ;;  %v1048_v13 = vpop.permute.xlu0 %1047 }
 0x25c   : > { %v1018_v11 = vadd.f32 %v1016_v10, %v1011_v4  ;;  %v1257_v10 = vld [vmem:[%s3355_s5 + $0x18] sm:$0xff]  ;;  %v1255_v4 = vld [vmem:[%s3355_s5 + $0x8] sm:$0xff] }
 0x25d   : > { %2236 = vmatpush3.msra.mxu1 %v1257_v10 }
 0x25e   : > { %v1022_v15 = vadd.f32 %v1021_v12, %v1018_v11  ;;  %2237 = vmatprep.subr.mxu1 %v2746_v0  ;;  %v1254_v11 = vld [vmem:[%s3355_s5] sm:$0xff] }
 0x25f   : > { %2238 = vmatpush3.msra.mxu1 %v1256_v9  ;;  %v605_v12 = vld [vmem:[%s600_s28] sm:$0xff] }
 0x260   : > { %v1029_v17 = vadd.f32 %v1027_v14, %v1022_v15  ;;  %2239 = vmatprep.subr.mxu1 %v2746_v0  ;;  %v606_v14 = vld [vmem:[%s600_s28 + $0x8] sm:$0x3]  ;;  %v608_v15 = vsel %vm607_vm2, %v605_v12, 0.0 }
 0x261   : > { %2240 = vmatpush3.msra.mxu1 %v1255_v4 }
 0x262   : > { %v1036_v18 = vadd.f32 %v1034_v16, %v1029_v17  ;;  %2241 = vmatprep.subr.mxu1 %v2746_v0  ;;  %v610_v16 = vsel %vm609_vm3, %v606_v14, 0.0 }
 0x263   : > { %2242 = vmatpush3.msra.mxu1 %v1254_v11  ;;  %v611_v17 = vadd.f32 %v610_v16, %v608_v15  ;;  %v1214_v16 = vstv %s2128_s0  ;;  %s2048_s0 = sshll.u32 %s3397_s22, 3 }
 0x264   : > { %v1043_v20 = vadd.f32 %v1041_v19, %v1036_v18  ;;  %2246 = vmatprep.subr.mxu1 %v2746_v0  ;;  %s604_s6 = scalar_lea.vmem %s3365_s15, %s2048_s0 }
 0x265   : > { %v612_v18 = vrot.slane %v611_v17, 4 }
 0x266   : > { %v1050_v23 = vadd.f32 %v1048_v13, %v1043_v20 }
 0x267   : > { %v613_v19 = vadd.f32 %v612_v18, %v611_v17 }
 0x268   : > { %v1052_v24 = vadd.f32 %v1051_v21, %v1050_v23 }
 0x269   : > { %v614_v20 = vrot.slane %v613_v19, 2 }
 0x26a   : > { %v1053_v25 = vmax.f32 %v1052_v24, 0.0 }
 0x26b   : > { %v615_v13 = vadd.f32 %v614_v20, %v613_v19 }
 0x26c   : > { %1055 = vrot.lane.b32.xlu1 %v1053_v25, %s2751_s2  ;;  %v1348_v25 = vld [vmem:[#allocation10 + $0x78] sm:$0xff] }
 0x26d   : > { %v616_v21 = vrot.slane %v615_v13, 1 }
 0x26f   : > { %v617_v23 = vadd.f32 %v616_v21, %v615_v13  ;;  %v1337_v21 = vld [vmem:[#allocation10 + $0x20] sm:$0xff] }
 0x271   : > { %v3197_v24 = vmul.f32 0.1, %v617_v23  ;;  %v1336_v23 = vld [vmem:[#allocation10 + $0x18] sm:$0xff] }
 0x273   : > { %2244 = vmatmul.mubr.msk.f32.vlgmr.msra.gmra.mxu1 %vm607_vm2, %v3197_v24 }
 0x274   : > { %2247 = vmatpush3.msra.mxu1 %v1348_v25  ;;  %2278 = vmatprep.mubr.msk.f32.mxu1 %vm2752_vm1, %v2746_v0 }
 0x275   : > { %2248 = vmatprep.subr.mxu1 %v2746_v0 }
 0x2de   : > { %v1056_v26 = vpop.permute.xlu1 %1055 }
 0x2df   : > { %1058 = vst.msk [vmem:[#allocation2 + $0x8] sm:$0xff] %vm863_vm0, %v1056_v26  ;;  %v1347_v26 = vld [vmem:[#allocation10 + $0x70] sm:$0xff] }
 0x2e0   : > { %2249 = vmatpush3.msra.mxu1 %v1347_v26  ;;  %v1335_v26 = vld [vmem:[#allocation10 + $0x10] sm:$0xff] }
 0x2e1   : > { %2250 = vmatprep.subr.mxu1 %v2746_v0 }
 0x2e6   : > { %v3118_v29 = vld [vmem:[#allocation2 + $0x6] sm:$0xff] }
 0x2e7   : > { %v1097_v30 = vmul.f32 %v1096_v22, %v3118_v29  ;;  %v1090_v27 = vmul.f32 %v1089_v28, %v3118_v29  ;;  %v1111_v33 = vmul.f32 %v1110_v31, %v3118_v29  ;;  %v1104_v34 = vmul.f32 %v1103_v32, %v3118_v29  ;;  %v3126_v35 = vld [vmem:[#allocation2 + $0x7] sm:$0xff]  ;;  %v1345_v28 = vld [vmem:[#allocation10 + $0x60] sm:$0xff] }
 0x2e8   : > { %v1129_v39 = vmul.f32 %v1128_v37, %v3126_v35  ;;  %v1122_v40 = vmul.f32 %v1121_v38, %v3126_v35  ;;  %v1143_v42 = vmul.f32 %v1142_v41, %v3126_v35  ;;  %v1136_v43 = vmul.f32 %v1135_v36, %v3126_v35  ;;  %v3136_v44 = vld [vmem:[#allocation2 + $0x8] sm:$0xff]  ;;  %v1346_v22 = vld [vmem:[#allocation10 + $0x68] sm:$0xff]  ;;  %v1341_v32 = vld [vmem:[#allocation10 + $0x40] sm:$0xff] }
 0x2e9   : > { %1099 = vrot.lane.b32.xlu1 %v1097_v30, %s2749_s17  ;;  %1092 = vrot.lane.b32.xlu0 %v1090_v27, %s2747_s16  ;;  %v1161_v48 = vmul.f32 %v1160_v46, %v3136_v44  ;;  %v1154_v45 = vmul.f32 %v1153_v47, %v3136_v44  ;;  %v1175_v51 = vmul.f32 %v1174_v49, %v3136_v44  ;;  %v3146_v53 = vld [vmem:[#allocation2 + $0x9] sm:$0xff]  ;;  %v1342_v31 = vld [vmem:[#allocation10 + $0x48] sm:$0xff]  ;;  %v1086_v38 = vstv %s2108_s1 }
 0x2ea   : > { %v1168_v52 = vmul.f32 %v1167_v50, %v3136_v44  ;;  %v1193_v56 = vmul.f32 %v1192_v54, %v3146_v53  ;;  %v1186_v57 = vmul.f32 %v1185_v55, %v3146_v53  ;;  %v1207_v58 = vmul.f32 %v1206_v59, %v3146_v53  ;;  %v3156_v62 = vld [vmem:[#allocation2 + $0xa] sm:$0xff]  ;;  %2251 = vmatpush3.msra.mxu1 %v1346_v22  ;;  %v1338_v37 = vld [vmem:[#allocation10 + $0x28] sm:$0xff] }
 0x2eb   : > { %v1200_v61 = vmul.f32 %v1199_v60, %v3146_v53  ;;  %v1225_v2 = vmul.f32 %v1224_v63, %v3156_v62  ;;  %v1218_v3 = vmul.f32 %v1217_v1, %v3156_v62  ;;  %v1239_v7 = vmul.f32 %v1238_v5, %v3156_v62  ;;  %2252 = vmatprep.subr.mxu1 %v2746_v0  ;;  %v1344_v30 = vld [vmem:[#allocation10 + $0x58] sm:$0xff]  ;;  %v1343_v27 = vld [vmem:[#allocation10 + $0x50] sm:$0xff] }
 0x2ec   : > { %v1232_v8 = vmul.f32 %v1231_v6, %v3156_v62  ;;  %2253 = vmatpush3.msra.mxu1 %v1345_v28  ;;  %v1118_v47 = vstv %s2113_s26  ;;  %v1182_v5 = vstv %s2123_s24  ;;  %v1215_v18 = vmul.f32 %v1214_v16, %v3156_v62 }
 0x2ed   : > { %1113 = vrot.lane.b32.xlu1 %v1111_v33, %s2750_s19  ;;  %1106 = vrot.lane.b32.xlu0 %v1104_v34, %s2748_s23  ;;  %v1340_v33 = vld [vmem:[#allocation10 + $0x38] sm:$0xff]  ;;  %v1339_v34 = vld [vmem:[#allocation10 + $0x30] sm:$0xff]  ;;  %v1119_v49 = vmul.f32 %v1118_v47, %v3126_v35  ;;  %v1183_v10 = vmul.f32 %v1182_v5, %v3146_v53  ;;  %v3219_v53 = vld [vmem:[#allocation2] sm:$0xff] }
 0x2ee   : > { %2254 = vmatprep.subr.mxu1 %v2746_v0  ;;  %v1452_v5 = vld [vmem:[#allocation12 + $0x30] sm:$0xff] }
 0x2ef   : > { %2255 = vmatpush3.msra.mxu1 %v1344_v30  ;;  %v1334_v30 = vld [vmem:[#allocation10 + $0x8] sm:$0xff] }
 0x2f0   : > { %2256 = vmatprep.subr.mxu1 %v2746_v0 }
 0x2f1   : > { %1131 = vrot.lane.b32.xlu1 %v1129_v39, %s2749_s17  ;;  %1124 = vrot.lane.b32.xlu0 %v1122_v40, %s2747_s16  ;;  %v1087_v39 = vmul.f32 %v1086_v38, %v3118_v29  ;;  %v1150_v29 = vstv %s2118_s27 }
 0x2f2   : > { %2257 = vmatpush3.msra.mxu1 %v1343_v27 }
 0x2f3   : > { %2258 = vmatprep.subr.mxu1 %v2746_v0 }
 0x2f4   : > { %2259 = vmatpush3.msra.mxu1 %v1342_v31  ;;  %v1245_v31 = vstv %s2133_s4 }
 0x2f5   : > { %1145 = vrot.lane.b32.xlu1 %v1143_v42, %s2750_s19  ;;  %1138 = vrot.lane.b32.xlu0 %v1136_v43, %s2748_s23 }
 0x2f6   : > { %2260 = vmatprep.subr.mxu1 %v2746_v0 }
 0x2f7   : > { %2261 = vmatpush3.msra.mxu1 %v1341_v32  ;;  %v1333_v32 = vld [vmem:[#allocation10] sm:$0xff] }
 0x2f8   : > { %2262 = vmatprep.subr.mxu1 %v2746_v0 }
 0x2f9   : > { %1163 = vrot.lane.b32.xlu1 %v1161_v48, %s2749_s17  ;;  %1156 = vrot.lane.b32.xlu0 %v1154_v45, %s2747_s16 }
 0x2fa   : > { %2263 = vmatpush3.msra.mxu1 %v1340_v33 }
 0x2fb   : > { %2264 = vmatprep.subr.mxu1 %v2746_v0 }
 0x2fc   : > { %2265 = vmatpush3.msra.mxu1 %v1339_v34 }
 0x2fd   : > { %1177 = vrot.lane.b32.xlu1 %v1175_v51, %s2750_s19  ;;  %1170 = vrot.lane.b32.xlu0 %v1168_v52, %s2748_s23 }
 0x2fe   : > { %2266 = vmatprep.subr.mxu1 %v2746_v0 }
 0x2ff   : > { %2267 = vmatpush3.msra.mxu1 %v1338_v37 }
 0x300   : > { %2268 = vmatprep.subr.mxu1 %v2746_v0 }
 0x301   : > { %1195 = vrot.lane.b32.xlu1 %v1193_v56, %s2749_s17  ;;  %1188 = vrot.lane.b32.xlu0 %v1186_v57, %s2747_s16 }
 0x302   : > { %2269 = vmatpush3.msra.mxu1 %v1337_v21  ;;  %v1618_v21 = vld [vmem:[#allocation13 + $0x68] sm:$0xff] }
 0x303   : > { %2270 = vmatprep.subr.mxu1 %v3219_v53 }
 0x304   : > { %2271 = vmatpush3.msra.mxu1 %v1336_v23  ;;  %v1617_v23 = vld [vmem:[#allocation13 + $0x60] sm:$0xff] }
 0x305   : > { %1209 = vrot.lane.b32.xlu1 %v1207_v58, %s2750_s19  ;;  %1202 = vrot.lane.b32.xlu0 %v1200_v61, %s2748_s23  ;;  %v1151_v61 = vmul.f32 %v1150_v29, %v3136_v44  ;;  %v1459_v29 = vld [vmem:[#allocation12 + $0x68] sm:$0xff] }
 0x306   : > { %2272 = vmatprep.subr.mxu1 %v3219_v53 }
 0x307   : > { %2273 = vmatpush3.msra.mxu1 %v1335_v26  ;;  %v1615_v26 = vld [vmem:[#allocation13 + $0x50] sm:$0xff] }
 0x308   : > { %2274 = vmatprep.subr.mxu1 %v3219_v53 }
 0x309   : > { %1227 = vrot.lane.b32.xlu1 %v1225_v2, %s2749_s17  ;;  %1220 = vrot.lane.b32.xlu0 %v1218_v3, %s2747_s16 }
 0x30a   : > { %2275 = vmatpush3.msra.mxu1 %v1334_v30  ;;  %v1612_v30 = vld [vmem:[#allocation13 + $0x38] sm:$0xff] }
 0x30b   : > { %2276 = vmatprep.subr.mxu1 %v3219_v53 }
 0x30c   : > { %2277 = vmatpush3.msra.mxu1 %v1333_v32 }
 0x30d   : > { %1241 = vrot.lane.b32.xlu1 %v1239_v7, %s2750_s19  ;;  %1234 = vrot.lane.b32.xlu0 %v1232_v8, %s2748_s23 }
 0x30e   : > { %2316 = vmatprep.subr.mxu1 %v3219_v53 }
 0x333   : > { %v1327_v38 = vpop.f32.mrf.mxu1 }
 0x35b   : > { %v1100_v40 = vpop.permute.xlu1 %1099  ;;  %v1093_v41 = vpop.permute.xlu0 %1092 }
 0x35c   : > { %v1095_v36 = vadd.f32 %v1093_v41, %v1087_v39  ;;  %v2245_v39 = vpop.f32.mrf.mxu1 }
 0x35d   : > { %v1709_v39 = vld [vmem:[#allocation13 + $0xf8] sm:$0xff] }
 0x35e   : > { %v1102_v42 = vadd.f32 %v1100_v40, %v1095_v36  ;;  %v1461_v36 = vld [vmem:[#allocation12 + $0x78] sm:$0xff] }
 0x35f   : > { %v1114_v43 = vpop.permute.xlu1 %1113  ;;  %v1107_v46 = vpop.permute.xlu0 %1106  ;;  %2282 = vmatpush3.msra.mxu0 %v1461_v36  ;;  %v1707_v36 = vld [vmem:[#allocation13 + $0xe8] sm:$0xff] }
 0x360   : > { %v1109_v48 = vadd.f32 %v1107_v46, %v1102_v42  ;;  %2283 = vmatprep.subr.mxu0 %v3219_v53  ;;  %v1350_v42 = vlaneseq  ;;  %v1253_v46 = vld [vmem:[%s3357_s7] sm:$0x1] }
 0x361   : > { %v1328_v47 = vadd.f32 %v1327_v38, %v1253_v46  ;;  %v1606_v38 = vld [vmem:[#allocation13 + $0x8] sm:$0xff] }
 0x362   : > { %v1116_v45 = vadd.f32 %v1114_v43, %v1109_v48  ;;  %v1351_v43 = vshrl.u32 %v1350_v42, 7  ;;  %v1706_v42 = vld [vmem:[#allocation13 + $0xe0] sm:$0xff] }
 0x363   : > { %v1132_v50 = vpop.permute.xlu1 %1131  ;;  %v1125_v51 = vpop.permute.xlu0 %1124 }
 0x364   : > { %v1120_v0 = vadd.f32 %v1119_v49, %v1116_v45  ;;  %v3234_v48 = vsub.s32 0, %v1351_v43  ;;  %v1331_v49 = vmax.f32 %v1328_v47, 0.0  ;;  %v1705_v43 = vld [vmem:[#allocation13 + $0xd8] sm:$0xff]  ;;  %v1703_v47 = vld [vmem:[#allocation13 + $0xc8] sm:$0xff] }
 0x366   : > { %v1127_v52 = vadd.f32 %v1125_v51, %v1120_v0  ;;  %v1353_v45 = vrot.slane %v1253_v46, %v3234_v48  ;;  %v1704_v46 = vld [vmem:[#allocation13 + $0xd0] sm:$0xff] }
 0x367   : > { %v1146_v54 = vpop.permute.xlu1 %1145  ;;  %v1139_v55 = vpop.permute.xlu0 %1138 }
 0x368   : > { %v1134_v56 = vadd.f32 %v1132_v50, %v1127_v52  ;;  %v1429_v52 = vrot.slane %v1331_v49, %v3234_v48  ;;  %v1701_v49 = vld [vmem:[#allocation13 + $0xb8] sm:$0xff] }
 0x36a   : > { %v1141_v57 = vadd.f32 %v1139_v55, %v1134_v56  ;;  %v1460_v56 = vld [vmem:[#allocation12 + $0x70] sm:$0xff] }
 0x36b   : > { %v1164_v59 = vpop.permute.xlu1 %1163  ;;  %v1157_v60 = vpop.permute.xlu0 %1156  ;;  %2284 = vmatpush3.msra.mxu0 %v1460_v56 }
 0x36c   : > { %v1148_v58 = vadd.f32 %v1146_v54, %v1141_v57  ;;  %2285 = vmatprep.subr.mxu0 %v3219_v53  ;;  %v1458_v57 = vld [vmem:[#allocation12 + $0x60] sm:$0xff] }
 0x36d   : > { %2286 = vmatpush3.msra.mxu0 %v1459_v29 }
 0x36e   : > { %v1152_v63 = vadd.f32 %v1151_v61, %v1148_v58  ;;  %2287 = vmatprep.subr.mxu0 %v3219_v53  ;;  %v1444_v58 = vld [vmem:[%s3358_s8 + $0x10] sm:$0xff]  ;;  %v1443_v61 = vld [vmem:[%s3358_s8 + $0x8] sm:$0xff] }
 0x36f   : > { %v1171_v1 = vpop.permute.xlu0 %1170  ;;  %v1178_v3 = vpop.permute.xlu1 %1177  ;;  %2288 = vmatpush3.msra.mxu0 %v1458_v57 }
 0x370   : > { %v1159_v2 = vadd.f32 %v1157_v60, %v1152_v63  ;;  %v1457_v60 = vld [vmem:[#allocation12 + $0x58] sm:$0xff]  ;;  %2289 = vmatprep.subr.mxu0 %v3219_v53  ;;  %v1456_v63 = vld [vmem:[#allocation12 + $0x50] sm:$0xff] }
 0x371   : > { %2290 = vmatpush3.msra.mxu0 %v1457_v60  ;;  %v1696_v60 = vld [vmem:[#allocation13 + $0x90] sm:$0xff] }
 0x372   : > { %v1166_v35 = vadd.f32 %v1164_v59, %v1159_v2  ;;  %v1445_v59 = vld [vmem:[%s3358_s8 + $0x18] sm:$0xff]  ;;  %2291 = vmatprep.subr.mxu0 %v3219_v53  ;;  %v1455_v2 = vld [vmem:[#allocation12 + $0x48] sm:$0xff] }
 0x373   : > { %v1189_v7 = vpop.permute.xlu0 %1188  ;;  %v1196_v9 = vpop.permute.xlu1 %1195  ;;  %2292 = vmatpush3.msra.mxu0 %v1456_v63  ;;  %v1798_v63 = vld [vmem:[#allocation15 + $0x78] sm:$0xff] }
 0x374   : > { %v1173_v6 = vadd.f32 %v1171_v1, %v1166_v35  ;;  %v1442_v1 = vld [vmem:[%s3358_s8] sm:$0xff]  ;;  %2293 = vmatprep.subr.mxu0 %v3219_v53  ;;  %v1453_v35 = vld [vmem:[#allocation12 + $0x38] sm:$0xff] }
 0x375   : > { %2294 = vmatpush3.msra.mxu0 %v1455_v2  ;;  %v1796_v2 = vld [vmem:[#allocation15 + $0x68] sm:$0xff] }
 0x376   : > { %v1180_v8 = vadd.f32 %v1178_v3, %v1173_v6  ;;  %v1454_v3 = vld [vmem:[#allocation12 + $0x40] sm:$0xff]  ;;  %2295 = vmatprep.subr.mxu0 %v3219_v53  ;;  %v1451_v6 = vld [vmem:[#allocation12 + $0x28] sm:$0xff] }
 0x377   : > { %v1203_v12 = vpop.permute.xlu0 %1202  ;;  %v1210_v15 = vpop.permute.xlu1 %1209  ;;  %2296 = vmatpush3.msra.mxu0 %v1454_v3  ;;  %v1795_v3 = vld [vmem:[#allocation15 + $0x60] sm:$0xff] }
 0x378   : > { %v1184_v4 = vadd.f32 %v1183_v10, %v1180_v8  ;;  %2297 = vmatprep.subr.mxu0 %v3219_v53  ;;  %v1448_v8 = vld [vmem:[#allocation12 + $0x10] sm:$0xff]  ;;  %v1447_v10 = vld [vmem:[#allocation12 + $0x8] sm:$0xff] }
 0x379   : > { %2298 = vmatpush3.msra.mxu0 %v1453_v35  ;;  %v1794_v35 = vld [vmem:[#allocation15 + $0x58] sm:$0xff] }
 0x37a   : > { %v1191_v11 = vadd.f32 %v1189_v7, %v1184_v4  ;;  %2299 = vmatprep.subr.mxu0 %v3219_v53  ;;  %v1449_v7 = vld [vmem:[#allocation12 + $0x18] sm:$0xff] }
 0x37b   : > { %v1221_v19 = vpop.permute.xlu0 %1220  ;;  %v1228_v13 = vpop.permute.xlu1 %1227  ;;  %2300 = vmatpush3.msra.mxu0 %v1452_v5  ;;  %v1793_v5 = vld [vmem:[#allocation15 + $0x50] sm:$0xff] }
 0x37c   : > { %v1198_v14 = vadd.f32 %v1196_v9, %v1191_v11  ;;  %2301 = vmatprep.subr.mxu0 %v3219_v53  ;;  %v1446_v9 = vld [vmem:[#allocation12] sm:$0xff] }
 0x37d   : > { %2302 = vmatpush3.msra.mxu0 %v1451_v6  ;;  %v1792_v6 = vld [vmem:[#allocation15 + $0x48] sm:$0xff] }
 0x37e   : > { %v1205_v44 = vadd.f32 %v1203_v12, %v1198_v14  ;;  %2303 = vmatprep.subr.mxu0 %v3219_v53 }
 0x37f   : > { %v1235_v28 = vpop.permute.xlu0 %1234  ;;  %v1242_v27 = vpop.permute.xlu1 %1241 }
 0x380   : > { %v1212_v17 = vadd.f32 %v1210_v15, %v1205_v44 }
 0x382   : > { %v1216_v20 = vadd.f32 %v1215_v18, %v1212_v17 }
 0x384   : > { %v1223_v25 = vadd.f32 %v1221_v19, %v1216_v20  ;;  %v1620_v20 = vld [vmem:[#allocation13 + $0x78] sm:$0xff] }
 0x386   : > { %v1230_v22 = vadd.f32 %v1228_v13, %v1223_v25  ;;  %v1619_v13 = vld [vmem:[#allocation13 + $0x70] sm:$0xff]  ;;  %v1616_v25 = vld [vmem:[#allocation13 + $0x58] sm:$0xff] }
 0x388   : > { %v1237_v62 = vadd.f32 %v1235_v28, %v1230_v22  ;;  %v1614_v22 = vld [vmem:[#allocation13 + $0x48] sm:$0xff]  ;;  %v1613_v28 = vld [vmem:[#allocation13 + $0x40] sm:$0xff] }
 0x38a   : > { %v1244_v33 = vadd.f32 %v1242_v27, %v1237_v62  ;;  %v1611_v62 = vld [vmem:[#allocation13 + $0x30] sm:$0xff]  ;;  %v1610_v27 = vld [vmem:[#allocation13 + $0x28] sm:$0xff] }
 0x38c   : > { %v1246_v34 = vadd.f32 %v1245_v31, %v1244_v33  ;;  %v1609_v31 = vld [vmem:[#allocation13 + $0x20] sm:$0xff] }
 0x38e   : > { %v1247_v37 = vmax.f32 %v1246_v34, 0.0  ;;  %v1608_v34 = vld [vmem:[#allocation13 + $0x18] sm:$0xff] }
 0x390   : > { %1249 = vrot.lane.b32.xlu0 %v1247_v37, %s2751_s2  ;;  %v1607_v37 = vld [vmem:[#allocation13 + $0x10] sm:$0xff] }
 0x402   : > { %v1250_v40 = vpop.permute.xlu0 %1249 }
 0x403   : > { %1252 = vst.msk [vmem:[#allocation2 + $0x8] sm:$0xff] %vm863_vm0, %v1250_v40  ;;  %v1708_v40 = vld [vmem:[#allocation13 + $0xf0] sm:$0xff] }
 0x40a   : > { %v1332_v41 = vld [vmem:[#allocation2 + $0x8] sm:$0xff] }
 0x40b   : > { %2279 = vmatmul.mubr.f32.vlgmr.msra.gmra.mxu1 %v1332_v41  ;;  %v1605_v41 = vld [vmem:[#allocation13] sm:$0xff] }
 0x40c   : > { %2324 = vmatprep.mubr.msk.f32.mxu1 %vm2752_vm1, %v3219_v53  ;;  %2317 = vmatpush3.msra.mxu1 %v1445_v59 }
 0x40d   : > { %2318 = vmatprep.subr.mxu1 %v3219_v53 }
 0x40e   : > { %2319 = vmatpush3.msra.mxu1 %v1444_v58  ;;  %v1695_v58 = vld [vmem:[#allocation13 + $0x88] sm:$0xff] }
 0x40f   : > { %2320 = vmatprep.subr.mxu1 %v3219_v53 }
 0x410   : > { %2321 = vmatpush3.msra.mxu1 %v1443_v61  ;;  %v1694_v61 = vld [vmem:[#allocation13 + $0x80] sm:$0xff] }
 0x411   : > { %2322 = vmatprep.subr.mxu1 %v3219_v53 }
 0x412   : > { %2323 = vmatpush3.msra.mxu1 %v1442_v1  ;;  %v1797_v1 = vld [vmem:[#allocation15 + $0x70] sm:$0xff] }
 0x413   : > { %2325 = vmatmul.mubr.msk.f32.vlgmr.msra.gmra.mxu1 %vm607_vm2, %v3197_v24  ;;  %2362 = vmatprep.subr.mxu1 %v3219_v53  ;;  %v1450_v24 = vld [vmem:[#allocation12 + $0x20] sm:$0xff] }
 0x414   : > { %2394 = vmatprep.mubr.msk.f32.mxu1 %vm2752_vm1, %v3219_v53  ;;  %2304 = vmatpush3.msra.mxu0 %v1450_v24  ;;  %v1791_v24 = vld [vmem:[#allocation15 + $0x40] sm:$0xff] }
 0x415   : > { %2305 = vmatprep.subr.mxu0 %v3219_v53  ;;  %2363 = vmatpush3.msra.mxu1 %v1709_v39 }
 0x416   : > { %2306 = vmatpush3.msra.mxu0 %v1449_v7  ;;  %2364 = vmatprep.subr.mxu1 %v3219_v53  ;;  %v1790_v7 = vld [vmem:[#allocation15 + $0x38] sm:$0xff] }
 0x417   : > { %2307 = vmatprep.subr.mxu0 %v3219_v53  ;;  %2365 = vmatpush3.msra.mxu1 %v1708_v40 }
 0x418   : > { %2308 = vmatpush3.msra.mxu0 %v1448_v8  ;;  %2366 = vmatprep.subr.mxu1 %v3219_v53  ;;  %v1789_v8 = vld [vmem:[#allocation15 + $0x30] sm:$0xff] }
 0x419   : > { %2309 = vmatprep.subr.mxu0 %v3219_v53  ;;  %2367 = vmatpush3.msra.mxu1 %v1707_v36 }
 0x41a   : > { %2310 = vmatpush3.msra.mxu0 %v1447_v10  ;;  %2368 = vmatprep.subr.mxu1 %v3219_v53  ;;  %v1788_v10 = vld [vmem:[#allocation15 + $0x28] sm:$0xff] }
 0x41b   : > { %2311 = vmatprep.subr.mxu0 %v3219_v53  ;;  %2369 = vmatpush3.msra.mxu1 %v1706_v42 }
 0x41c   : > { %2312 = vmatpush3.msra.mxu0 %v1446_v9  ;;  %2370 = vmatprep.subr.mxu1 %v3219_v53  ;;  %v1787_v9 = vld [vmem:[#allocation15 + $0x20] sm:$0xff] }
 0x41d   : > { %2327 = vmatprep.subr.mxu0 %v3219_v53  ;;  %2371 = vmatpush3.msra.mxu1 %v1705_v43 }
 0x41e   : > { %2372 = vmatprep.subr.mxu1 %v3219_v53 }
 0x41f   : > { %2373 = vmatpush3.msra.mxu1 %v1704_v46 }
 0x420   : > { %2374 = vmatprep.subr.mxu1 %v3219_v53 }
 0x421   : > { %2375 = vmatpush3.msra.mxu1 %v1703_v47 }
 0x422   : > { %2376 = vmatprep.subr.mxu1 %v3219_v53 }
 0x4cb   : > { %v1421_v50 = vpop.f32.mrf.mxu1 }
 0x4cc   : > { %v3237_v51 = vadd.f32 %v1421_v50, %v1353_v45  ;;  %v1702_v45 = vld [vmem:[#allocation13 + $0xc0] sm:$0xff]  ;;  %v1700_v50 = vld [vmem:[#allocation13 + $0xb0] sm:$0xff] }
 0x4cd   : > { %v2280_v0 = vpop.f32.mrf.mxu1  ;;  %2377 = vmatpush3.msra.mxu1 %v1702_v45 }
 0x4ce   : > { %v1425_v54 = vmax.f32 %v3237_v51, 0.0  ;;  %2378 = vmatprep.subr.mxu1 %v3219_v53  ;;  %v1699_v51 = vld [vmem:[#allocation13 + $0xa8] sm:$0xff]  ;;  %v1698_v0 = vld [vmem:[#allocation13 + $0xa0] sm:$0xff] }
 0x4cf   : > { %2379 = vmatpush3.msra.mxu1 %v1701_v49 }
 0x4d0   : > { %v1430_v55 = vmul.f32 %v1429_v52, %v1425_v54  ;;  %2380 = vmatprep.subr.mxu1 %v3219_v53  ;;  %v1697_v52 = vld [vmem:[#allocation13 + $0x98] sm:$0xff] }
 0x4d1   : > { %2381 = vmatpush3.msra.mxu1 %v1700_v50 }
 0x4d2   : > { %1431 = vadd.xlane.f32.xlu1 %v1430_v55  ;;  %2382 = vmatprep.subr.mxu1 %v3219_v53  ;;  %v1602_v55 = vld [vmem:[%s3360_s10] sm:$0x1] }
 0x4d3   : > { %v1598_v32 = vpop.f32.mrf.mxu1  ;;  %2383 = vmatpush3.msra.mxu1 %v1699_v51 }
 0x4d4   : > { %2384 = vmatprep.subr.mxu1 %v3219_v53 }
 0x4d5   : > { %v2326_v33 = vpop.f32.mrf.mxu1  ;;  %2385 = vmatpush3.msra.mxu1 %v1698_v0 }
 0x4d6   : > { %2386 = vmatprep.subr.mxu1 %v3219_v53 }
 0x4d7   : > { %2387 = vmatpush3.msra.mxu1 %v1697_v52 }
 0x4d8   : > { %2388 = vmatprep.subr.mxu1 %v3219_v53 }
 0x4d9   : > { %2389 = vmatpush3.msra.mxu1 %v1696_v60 }
 0x4da   : > { %2390 = vmatprep.subr.mxu1 %v3219_v53 }
 0x4db   : > { %2391 = vmatpush3.msra.mxu1 %v1695_v58 }
 0x4dc   : > { %2392 = vmatprep.subr.mxu1 %v3219_v53 }
 0x4dd   : > { %2393 = vmatpush3.msra.mxu1 %v1694_v61 }
 0x55b   : > { %v1432_v4 = vpop.xlane.xlu1 %1431 }
 0x55c   : > { %2530 = vtanh.f32 %v1432_v4  ;;  %v1786_v4 = vld [vmem:[#allocation15 + $0x18] sm:$0xff] }
 0x569   : > { %v2531_v11 = vpop.eup %2530 }
 0x56a   : > { %v1434_v12 = vmul.f32 %v2531_v11, %v1425_v54  ;;  %v1621_v11 = vld [vmem:[%s3362_s12] sm:$0x1] }
 0x56c   : > { %v1435_v14 = vrot.slane %v1434_v12, 4 }
 0x56e   : > { %v1436_v15 = vadd.f32 %v1435_v14, %v1434_v12 }
 0x570   : > { %v1437_v16 = vrot.slane %v1436_v15, 2 }
 0x572   : > { %v1438_v44 = vadd.f32 %v1437_v16, %v1436_v15 }
 0x574   : > { %v1439_v17 = vrot.slane %v1438_v44, 1 }
 0x576   : > { %v1440_v18 = vadd.f32 %v1439_v17, %v1438_v44  ;;  %v1785_v44 = vld [vmem:[#allocation15 + $0x10] sm:$0xff]  ;;  %v1784_v17 = vld [vmem:[#allocation15 + $0x8] sm:$0xff] }
 0x578   : > { %v1441_v19 = vmul.f32 0.125, %v1440_v18  ;;  %v1783_v18 = vld [vmem:[#allocation15] sm:$0xff] }
 0x57a   : > { %2314 = vmatmul.mubr.f32.vlgmr.msra.gmra.mxu0 %v1441_v19  ;;  %v2136_v19 = vld [vmem:[%s3362_s12 + $0x1] sm:$0x1] }
 0x57b   : > { %2328 = vmatpush3.msra.mxu0 %v1620_v20  ;;  %2359 = vmatprep.mubr.msk.f32.mxu0 %vm2752_vm1, %v3219_v53 }
 0x57c   : > { %2329 = vmatprep.subr.mxu0 %v3219_v53 }
 0x57d   : > { %2330 = vmatpush3.msra.mxu0 %v1619_v13 }
 0x57e   : > { %2331 = vmatprep.subr.mxu0 %v3219_v53 }
 0x57f   : > { %2332 = vmatpush3.msra.mxu0 %v1618_v21 }
 0x580   : > { %2333 = vmatprep.subr.mxu0 %v3219_v53 }
 0x581   : > { %2334 = vmatpush3.msra.mxu0 %v1617_v23 }
 0x582   : > { %2335 = vmatprep.subr.mxu0 %v3219_v53 }
 0x583   : > { %2336 = vmatpush3.msra.mxu0 %v1616_v25  ;;  %v1799_v25 = vld [vmem:[%s3364_s14] sm:$0x1] }
 0x584   : > { %2337 = vmatprep.subr.mxu0 %v3219_v53 }
 0x585   : > { %2338 = vmatpush3.msra.mxu0 %v1615_v26 }
 0x586   : > { %2339 = vmatprep.subr.mxu0 %v3219_v53 }
 0x587   : > { %2340 = vmatpush3.msra.mxu0 %v1614_v22 }
 0x588   : > { %2341 = vmatprep.subr.mxu0 %v3219_v53 }
 0x589   : > { %2342 = vmatpush3.msra.mxu0 %v1613_v28 }
 0x58a   : > { %2343 = vmatprep.subr.mxu0 %v3219_v53 }
 0x58b   : > { %2344 = vmatpush3.msra.mxu0 %v1612_v30 }
 0x58c   : > { %2345 = vmatprep.subr.mxu0 %v3219_v53 }
 0x58d   : > { %2346 = vmatpush3.msra.mxu0 %v1611_v62 }
 0x58e   : > { %2347 = vmatprep.subr.mxu0 %v3219_v53 }
 0x58f   : > { %2348 = vmatpush3.msra.mxu0 %v1610_v27 }
 0x590   : > { %2349 = vmatprep.subr.mxu0 %v3219_v53 }
 0x591   : > { %2350 = vmatpush3.msra.mxu0 %v1609_v31 }
 0x592   : > { %2351 = vmatprep.subr.mxu0 %v3219_v53 }
 0x593   : > { %2352 = vmatpush3.msra.mxu0 %v1608_v34 }
 0x594   : > { %2353 = vmatprep.subr.mxu0 %v3219_v53 }
 0x595   : > { %2354 = vmatpush3.msra.mxu0 %v1607_v37 }
 0x596   : > { %2355 = vmatprep.subr.mxu0 %v3219_v53 }
 0x597   : > { %2356 = vmatpush3.msra.mxu0 %v1606_v38 }
 0x598   : > { %2357 = vmatprep.subr.mxu0 %v3219_v53 }
 0x599   : > { %2358 = vmatpush3.msra.mxu0 %v1605_v41 }
 0x59a   : > { %2397 = vmatprep.subr.mxu0 %v3219_v53 }
 0x63a   : > { %v1528_v54 = vpop.f32.mrf.mxu0 }
 0x63b   : > { %v1599_v56 = vadd.f32 %v1598_v32, %v1528_v54 }
 0x63c   : > { %v2315_v29 = vpop.f32.mrf.mxu0 }
 0x63d   : > { %v1603_v57 = vadd.f32 %v1602_v55, %v1599_v56 }
 0x63f   : > { %v1604_v59 = vmax.f32 %v1603_v57, 0.0 }
 0x641   : > { %2360 = vmatmul.mubr.f32.vlgmr.msra.gmra.mxu0 %v1604_v59 }
 0x642   : > { %2429 = vmatprep.mubr.msk.f32.mxu0 %vm2752_vm1, %v3219_v53  ;;  %2398 = vmatpush3.msra.mxu0 %v1798_v63 }
 0x643   : > { %2399 = vmatprep.subr.mxu0 %v3219_v53 }
 0x644   : > { %2400 = vmatpush3.msra.mxu0 %v1797_v1 }
 0x645   : > { %2401 = vmatprep.subr.mxu0 %v3219_v53 }
 0x646   : > { %2402 = vmatpush3.msra.mxu0 %v1796_v2 }
 0x647   : > { %2403 = vmatprep.subr.mxu0 %v3219_v53 }
 0x648   : > { %2404 = vmatpush3.msra.mxu0 %v1795_v3 }
 0x649   : > { %2405 = vmatprep.subr.mxu0 %v3219_v53 }
 0x64a   : > { %2406 = vmatpush3.msra.mxu0 %v1794_v35 }
 0x64b   : > { %2407 = vmatprep.subr.mxu0 %v3219_v53 }
 0x64c   : > { %2408 = vmatpush3.msra.mxu0 %v1793_v5 }
 0x64d   : > { %2409 = vmatprep.subr.mxu0 %v3219_v53 }
 0x64e   : > { %2410 = vmatpush3.msra.mxu0 %v1792_v6 }
 0x64f   : > { %2411 = vmatprep.subr.mxu0 %v3219_v53 }
 0x650   : > { %2412 = vmatpush3.msra.mxu0 %v1791_v24 }
 0x651   : > { %2413 = vmatprep.subr.mxu0 %v3219_v53 }
 0x652   : > { %2414 = vmatpush3.msra.mxu0 %v1790_v7 }
 0x653   : > { %2415 = vmatprep.subr.mxu0 %v3219_v53 }
 0x654   : > { %2416 = vmatpush3.msra.mxu0 %v1789_v8 }
 0x655   : > { %2417 = vmatprep.subr.mxu0 %v3219_v53 }
 0x656   : > { %2418 = vmatpush3.msra.mxu0 %v1788_v10 }
 0x657   : > { %2419 = vmatprep.subr.mxu0 %v3219_v53 }
 0x658   : > { %2420 = vmatpush3.msra.mxu0 %v1787_v9 }
 0x659   : > { %2421 = vmatprep.subr.mxu0 %v3219_v53 }
 0x65a   : > { %2422 = vmatpush3.msra.mxu0 %v1786_v4 }
 0x65b   : > { %2423 = vmatprep.subr.mxu0 %v3219_v53 }
 0x65c   : > { %2424 = vmatpush3.msra.mxu0 %v1785_v44 }
 0x65d   : > { %2425 = vmatprep.subr.mxu0 %v3219_v53 }
 0x65e   : > { %2426 = vmatpush3.msra.mxu0 %v1784_v17 }
 0x65f   : > { %2427 = vmatprep.subr.mxu0 %v3219_v53 }
 0x660   : > { %2428 = vmatpush3.msra.mxu0 %v1783_v18 }
 0x701   : > { %v1688_v12 = vpop.f32.mrf.mxu0 }
 0x702   : > { %v1689_v14 = vadd.f32 %v1688_v12, %v1621_v11 }
 0x703   : > { %v2361_v15 = vpop.f32.mrf.mxu0 }
 0x704   : > { %v1692_v16 = vmax.f32 %v1689_v14, 0.0 }
 0x706   : > { %2395 = vmatmul.mubr.f32.vlgmr.msra.gmra.mxu1 %v1692_v16 }
 0x7c6   : > { %v1778_v20 = vpop.f32.mrf.mxu1 }
 0x7c7   : > { %v1779_v13 = vadd.f32 %v2136_v19, %v1778_v20 }
 0x7c8   : > { %v2396_v21 = vpop.f32.mrf.mxu1 }
 0x7c9   : > { %v1782_v23 = vmax.f32 %v1779_v13, 0.0 }
 0x7cb   : > { %2430 = vmatmul.mubr.f32.vlgmr.msra.gmra.mxu0 %v1782_v23 }
 0x88b   : > { %v1866_v26 = vpop.f32.mrf.mxu0 }
 0x88c   : > { %v1867_v22 = vadd.f32 %v1866_v26, %v1799_v25 }
 0x88d   : > { %v2431_v53 = vpop.f32.mrf.mxu0 }
 0x88e   : > { %v1873_v28 = vrot.slane %v1867_v22, %v3234_v48 }
 0x890   : > { %1874 = vst [vmem:[%s604_s6] sm:$0xff] %v1873_v28 }
 0x891 PF: > { %s30_s18 = sadd.s32 1, %s2734_s18  }
 0x892   : > { %p27_p13 = scmp.ge.s32.totalorder %s30_s18, 6  }
 0x894   :  { %29 = sbr.rel (!%p27_p13) target bundleno = 13 (0xd), region = 154 }
 0x899   :  { %1894 = vsyncpa [#allocation4], 1 }
 0x89a   :  { %1896 = vsyncpa [#allocation4 + $0x1], 1 }
 0x89b   :  { %1897 = vsyncpa [#allocation11], 1 }
 0x89c   :  { %1898 = vsyncpa [#allocation14], 1 }
 0x89d   :  { %1899 = vsyncpa [#allocation5], 1 }
 0x89e   :  { %1901 = vsyncpa [#allocation5 + $0x1], 1 }
 0x89f   :  { %1902 = vsyncpa [#allocation7], 1 }

</bundles_post_ra>
